<compile_context>
chip_gen: v5e
topology: v5e:2x2
jax: 0.10.0
libtpu: 0.0.40
codegen_flags: <defaults>
</compile_context>

<pallas_src>
import math
from functools import partial

import jax
import jax.numpy as jnp
import numpy as np
from jax.experimental import pallas as pl
from jax.experimental.pallas import tpu as pltpu


# --------------------------------------------------------------------------
# Kernel 1: fused projection of BOTH views + running sum of diag(sim(h1,h2))
# --------------------------------------------------------------------------
def _projection_kernel(z1_ref, z2_ref, w1_ref, b1_ref, w2_ref, b2_ref,
                       h1_ref, h2_ref, sdot_ref):
    @pl.when(pl.program_id(0) == 0)
    def _():
        sdot_ref[...] = jnp.zeros_like(sdot_ref)

    w1 = w1_ref[...]
    b1 = b1_ref[...]
    w2 = w2_ref[...]
    b2 = b2_ref[...]

    def project(z):
        a = jnp.dot(z, w1, preferred_element_type=jnp.float32) + b1
        # ELU (guard exp against the discarded large-positive branch)
        a = jnp.where(a > 0.0, a, jnp.exp(jnp.minimum(a, 0.0)) - 1.0)
        h = jnp.dot(a, w2, preferred_element_type=jnp.float32) + b2
        inv_norm = jax.lax.rsqrt(
            jnp.maximum(jnp.sum(h * h, axis=1, keepdims=True), 1e-24))
        return h * inv_norm                       # F.normalize(p=2, dim=1)

    h1 = project(z1_ref[...])
    h2 = project(z2_ref[...])
    h1_ref[...] = h1.astype(h1_ref.dtype)         # bf16 for the MXU-heavy loss
    h2_ref[...] = h2.astype(h2_ref.dtype)
    # sum_i <h1_i, h2_i>  (f32): gives all diag(e12)=diag(e21) terms analytically
    sdot_ref[...] += jnp.sum(h1 * h2, keepdims=True)


# --------------------------------------------------------------------------
# Kernel 2: tiled losses over (row_block, col_block) tiles of the N x N space
# --------------------------------------------------------------------------
def _loss_kernel(h1r_ref, h2r_ref, h1c_ref, h2c_ref,
                 pos_ref, neg_ref, post_ref, negt_ref,
                 unsup_ref, p12_ref, q12_ref, p21_ref, q21_ref,
                 den1_ref, den2_ref, *, inv_tau, diag_const):
    i = pl.program_id(0)
    j = pl.program_id(1)
    ni = pl.num_programs(0)
    nj = pl.num_programs(1)

    @pl.when(jnp.logical_and(i == 0, j == 0))
    def _init():
        den2_ref[...] = jnp.zeros_like(den2_ref)
        unsup_ref[...] = jnp.zeros_like(unsup_ref)
        p12_ref[...] = jnp.zeros_like(p12_ref)
        q12_ref[...] = jnp.zeros_like(q12_ref)
        p21_ref[...] = jnp.zeros_like(p21_ref)
        q21_ref[...] = jnp.zeros_like(q21_ref)

    @pl.when(j == 0)
    def _reset_row_acc():
        den1_ref[...] = jnp.zeros_like(den1_ref)

    # contract feature dims directly (no materialized transpose), bf16 -> f32 acc
    dn = (((1,), (1,)), ((), ()))
    h1r = h1r_ref[...]
    h2r = h2r_ref[...]
    h1c = h1c_ref[...]
    h2c = h2c_ref[...]

    e11 = jnp.exp(jax.lax.dot_general(
        h1r, h1c, dn, preferred_element_type=jnp.float32) * inv_tau)
    e12 = jnp.exp(jax.lax.dot_general(
        h1r, h2c, dn, preferred_element_type=jnp.float32) * inv_tau)
    e22 = jnp.exp(jax.lax.dot_general(
        h2r, h2c, dn, preferred_element_type=jnp.float32) * inv_tau)
    # e21 is never formed: rowsum(e21) = colsum(e12); diag(e21) handled analytically;
    # masked e21 sums use transposed masks against e12.

    # --- unsupervised denominators (streaming accumulators) -------------------
    # den1[r] = sum_c e11[r,c] + sum_c e12[r,c]                (row-indexed)
    den1_ref[...] += jnp.sum(e11 + e12, axis=1, keepdims=True)          # (bm, 1)
    # den2[c] = sum_r e22[r,c] + sum_r e12[r,c]  (= rowsum(e22)+rowsum(e21), e22 sym.)
    den2_ref[j] = den2_ref[j] + jnp.sum(e12 + e22, axis=0, keepdims=True)  # (1, bk)

    # --- label-loss masked sums (dir 2->1 reuses e12 with transposed masks) ----
    p12_ref[...] += jnp.sum(pos_ref[...].astype(jnp.float32) * e12, keepdims=True)
    q12_ref[...] += jnp.sum(neg_ref[...].astype(jnp.float32) * e12, keepdims=True)
    p21_ref[...] += jnp.sum(post_ref[...].astype(jnp.float32) * e12, keepdims=True)
    q21_ref[...] += jnp.sum(negt_ref[...].astype(jnp.float32) * e12, keepdims=True)

    # --- finalize this row block (after the full column sweep) ----------------
    @pl.when(j == nj - 1)
    def _finish_row_block():
        # diag(e11) == exp(1/tau) analytically (rows are unit-norm)
        unsup_ref[...] += 0.5 * jnp.sum(
            jnp.log(den1_ref[...] - diag_const), keepdims=True)

    # --- finalize this column block (complete once the last row block ran) ----
    @pl.when(i == ni - 1)
    def _finish_col_block():
        unsup_ref[...] += 0.5 * jnp.sum(
            jnp.log(den2_ref[j] - diag_const), keepdims=True)


# --------------------------------------------------------------------------
# Wrapper
# --------------------------------------------------------------------------
def _round_up(x, m):
    return ((x + m - 1) // m) * m


class LossPallas:
    """JAX/Pallas equivalent of the PyTorch Loss module (forward pass only)."""

    def __init__(self, hidden_dim, batch_size=1, tau=0.5, key=None):
        self.hidden_dim = int(hidden_dim)
        self.tau = float(tau)
        if key is None:
            key = jax.random.PRNGKey(0)
        kw1, kb1, kw2, kb2 = jax.random.split(key, 4)
        bound = 1.0 / math.sqrt(hidden_dim)          # nn.Linear default init
        self.W1 = jax.random.uniform(kw1, (hidden_dim, hidden_dim), jnp.float32, -bound, bound)
        self.b1 = jax.random.uniform(kb1, (hidden_dim,), jnp.float32, -bound, bound)
        self.W2 = jax.random.uniform(kw2, (hidden_dim, hidden_dim), jnp.float32, -bound, bound)
        self.b2 = jax.random.uniform(kb2, (hidden_dim,), jnp.float32, -bound, bound)

    # ---------------- fused projection of both views (one pallas_call) -------
    def _project_both(self, z1, z2, block_m):
        n, h = z1.shape
        hp = max(128, _round_up(h, 128))             # lane-dense feature dim
        pad = lambda x: jnp.zeros((n, hp), jnp.float32).at[:, :h].set(x.astype(jnp.float32))
        z1p, z2p = pad(z1), pad(z2)
        w1p = jnp.zeros((hp, hp), jnp.float32).at[:h, :h].set(self.W1.T)
        w2p = jnp.zeros((hp, hp), jnp.float32).at[:h, :h].set(self.W2.T)
        b1p = jnp.zeros((1, hp), jnp.float32).at[0, :h].set(self.b1)
        b2p = jnp.zeros((1, hp), jnp.float32).at[0, :h].set(self.b2)

        row_spec = pl.BlockSpec((block_m, hp), lambda i: (i, 0))
        w_spec = pl.BlockSpec((hp, hp), lambda i: (0, 0))
        b_spec = pl.BlockSpec((1, hp), lambda i: (0, 0))
        s_spec = pl.BlockSpec((1, 1), lambda i: (0, 0))

        h1, h2, sdot = pl.pallas_call(
            _projection_kernel,
            grid=(n // block_m,),
            in_specs=[row_spec, row_spec, w_spec, b_spec, w_spec, b_spec],
            out_specs=[row_spec, row_spec, s_spec],
            out_shape=(
                jax.ShapeDtypeStruct((n, hp), jnp.bfloat16),
                jax.ShapeDtypeStruct((n, hp), jnp.bfloat16),
                jax.ShapeDtypeStruct((1, 1), jnp.float32),
            ),
            compiler_params=pltpu.CompilerParams(
                dimension_semantics=("arbitrary",)),
        )(z1p, z2p, w1p, b1p, w2p, b2p)
        return h1, h2, sdot

    # ---------------- tiled losses -------------------------------------------
    def _losses(self, h1, h2, pos_b, neg_b, post_b, negt_b, block_m, block_k):
        n, hp = h1.shape
        n_col_blocks = n // block_k

        row_spec = pl.BlockSpec((block_m, hp), lambda i, j: (i, 0))
        col_spec = pl.BlockSpec((block_k, hp), lambda i, j: (j, 0))
        msk_spec = pl.BlockSpec((block_m, block_k), lambda i, j: (i, j))
        sc_spec = pl.BlockSpec((1, 1), lambda i, j: (0, 0))
        sc_shape = jax.ShapeDtypeStruct((1, 1), jnp.float32)

        kernel = partial(_loss_kernel,
                         inv_tau=1.0 / self.tau,
                         diag_const=math.exp(1.0 / self.tau))

        return pl.pallas_call(
            kernel,
            grid=(n // block_m, n_col_blocks),
            in_specs=[row_spec, row_spec, col_spec, col_spec,
                      msk_spec, msk_spec, msk_spec, msk_spec],
            out_specs=[sc_spec, sc_spec, sc_spec, sc_spec, sc_spec],
            out_shape=(sc_shape, sc_shape, sc_shape, sc_shape, sc_shape),
            scratch_shapes=[
                pltpu.VMEM((block_m, 1), jnp.float32),                 # den1 (row block)
                pltpu.VMEM((n_col_blocks, 1, block_k), jnp.float32),   # den2 (all columns)
            ],
            compiler_params=pltpu.CompilerParams(
                dimension_semantics=("arbitrary", "arbitrary")),
        )(h1, h2, h1, h2, pos_b, neg_b, post_b, negt_b)

    def __call__(self, z1, z2, pos_mask, neg_mask):
        n = z1.shape[0]
        # TODO(synk): N not divisible by 128 falls back to a single full block.
        block_m = 128 if n % 128 == 0 else n
        block_k = block_m

        h1, h2, sdot = self._project_both(z1, z2, block_m)

        eye = jnp.eye(n, dtype=jnp.float32)
        pos = pos_mask.astype(jnp.float32)
        negnd = neg_mask.astype(jnp.float32) * (1.0 - eye)   # cal_loss2 drops sim(i,i) from neg
        pos_b = pos.astype(jnp.bfloat16)
        neg_b = negnd.astype(jnp.bfloat16)
        post_b = pos.T.astype(jnp.bfloat16)
        negt_b = negnd.T.astype(jnp.bfloat16)

        unsup_p, p12, q12, p21, q21 = self._losses(
            h1, h2, pos_b, neg_b, post_b, negt_b, block_m, block_k)

        # unsup = mean_i[ -<h1_i,h2_i>/tau + 0.5 log(den1_i - e^{1/tau})
        #                                  + 0.5 log(den2_i - e^{1/tau}) ]
        unsup = (unsup_p[0, 0] - sdot[0, 0] / self.tau) / n
        # semi = 0.5 * ( -log(P12/(P12+Q12)) - log(P21/(P21+Q21)) )
        n12 = p12[0, 0] + q12[0, 0]
        n21 = p21[0, 0] + q21[0, 0]
        semi = 0.5 * ((jnp.log(n12) - jnp.log(p12[0, 0])) +
                      (jnp.log(n21) - jnp.log(p21[0, 0])))
        return unsup, semi


# --------------------------------------------------------------------------
# Pure-JAX f32 reference (same math as the PyTorch module)
# --------------------------------------------------------------------------
def _reference_losses(z1, z2, W1, b1, W2, b2, pos_mask, neg_mask, tau):
    def proj(z):
        a = z @ W1.T + b1
        a = jnp.where(a > 0.0, a, jnp.exp(jnp.minimum(a, 0.0)) - 1.0)
        return a @ W2.T + b2

    def norm(x):
        return x / jnp.maximum(jnp.linalg.norm(x, axis=1, keepdims=True), 1e-12)

    h1 = norm(proj(z1))
    h2 = norm(proj(z2))
    f = lambda s: jnp.exp(s / tau)
    e11, e12, e21, e22 = f(h1 @ h1.T), f(h1 @ h2.T), f(h2 @ h1.T), f(h2 @ h2.T)
    l1 = -jnp.log(jnp.diag(e12) / (e11.sum(1) + e12.sum(1) - jnp.diag(e11)))
    l2 = -jnp.log(jnp.diag(e21) / (e22.sum(1) + e21.sum(1) - jnp.diag(e22)))
    unsup = jnp.mean(0.5 * (l1 + l2))

    n = z1.shape[0]
    negnd = neg_mask * (1.0 - jnp.eye(n, dtype=jnp.float32))
    P12 = jnp.sum(pos_mask * e12)
    Q12 = jnp.sum(negnd * e12)
    P21 = jnp.sum(pos_mask * e21)
    Q21 = jnp.sum(negnd * e21)
    semi = 0.5 * (-jnp.log(P12 / (P12 + Q12)) - jnp.log(P21 / (P21 + Q21)))
    return unsup, semi


# --------------------------------------------------------------------------
# Demo
# --------------------------------------------------------------------------
if __name__ == "__main__":
    N, H = 256, 64
    TAU = 0.5
    key = jax.random.PRNGKey(0)
    kz1, kz2, klab, kparams = jax.random.split(key, 4)

    z1 = jax.random.normal(kz1, (N, H), jnp.float32)
    z2 = jax.random.normal(kz2, (N, H), jnp.float32)

    # pos[i] = {j : label(j)==label(i)} (includes i); neg[i] = {i} U {j : label(j)!=label(i)}
    labels = jax.random.randint(klab, (N,), 0, 4)
    same = labels[:, None] == labels[None, :]
    eye = jnp.eye(N, dtype=bool)
    pos_mask = same.astype(jnp.float32)
    neg_mask = jnp.logical_or(jnp.logical_not(same), eye).astype(jnp.float32)

    loss_mod = LossPallas(hidden_dim=H, tau=TAU, key=kparams)
    unsup, semi = loss_mod(z1, z2, pos_mask, neg_mask)
    unsup, semi = jax.block_until_ready((unsup, semi))

    ref_unsup, ref_semi = _reference_losses(
        z1, z2, loss_mod.W1, loss_mod.b1, loss_mod.W2, loss_mod.b2,
        pos_mask, neg_mask, TAU)
    np.testing.assert_allclose(np.asarray(unsup), np.asarray(ref_unsup),
                               rtol=0.05, atol=0.05)
    np.testing.assert_allclose(np.asarray(semi), np.asarray(ref_semi),
                               rtol=0.05, atol=0.05)
    print("KERNEL_OK")
</pallas_src>

<mosaic_0001>
module attributes {stable_mosaic.version = 11 : i64} {
  func.func @_projection_kernel(%arg0: i32, %arg1: memref<128x128xf32, #tpu.memory_space<vmem>>, %arg2: memref<128x128xf32, #tpu.memory_space<vmem>>, %arg3: memref<128x128xf32, #tpu.memory_space<vmem>>, %arg4: memref<1x128xf32, #tpu.memory_space<vmem>>, %arg5: memref<128x128xf32, #tpu.memory_space<vmem>>, %arg6: memref<1x128xf32, #tpu.memory_space<vmem>>, %arg7: memref<128x128xbf16, #tpu.memory_space<vmem>>, %arg8: memref<128x128xbf16, #tpu.memory_space<vmem>>, %arg9: memref<1x1xf32, #tpu.memory_space<vmem>>) attributes {dimension_semantics = [#tpu.dimension_semantics<arbitrary>], iteration_bounds = array<i64: 2>, scalar_prefetch = 0 : i64, scratch_operands = 0 : i64, tpu.core_type = #tpu.core_type<tc>, window_params = [{transform_indices = @transform_0, window_bounds = array<i64: 128, 128>}, {transform_indices = @transform_1, window_bounds = array<i64: 128, 128>}, {pipeline_mode = #tpu.pipeline_mode<synchronous>, transform_indices = @transform_2, window_bounds = array<i64: 128, 128>}, {pipeline_mode = #tpu.pipeline_mode<synchronous>, transform_indices = @transform_3, window_bounds = array<i64: 1, 128>}, {pipeline_mode = #tpu.pipeline_mode<synchronous>, transform_indices = @transform_4, window_bounds = array<i64: 128, 128>}, {pipeline_mode = #tpu.pipeline_mode<synchronous>, transform_indices = @transform_5, window_bounds = array<i64: 1, 128>}, {transform_indices = @transform_6, window_bounds = array<i64: 128, 128>}, {transform_indices = @transform_7, window_bounds = array<i64: 128, 128>}, {pipeline_mode = #tpu.pipeline_mode<synchronous>, transform_indices = @transform_8, window_bounds = array<i64: 1, 1>}]} {
    %c0_i32 = arith.constant 0 : i32
    %0 = arith.cmpi eq, %arg0, %c0_i32 : i32
    %1 = arith.extui %0 : i1 to i32
    %c0_i32_0 = arith.constant 0 : i32
    %2 = arith.cmpi ne, %1, %c0_i32_0 : i32
    scf.if %2 {
      %cst_34 = arith.constant 0.000000e+00 : f32
      %66 = vector.broadcast %cst_34 : f32 to vector<1x1xf32>
      %c0_35 = arith.constant 0 : index
      %c0_36 = arith.constant 0 : index
      %67 = vector.load %arg9[%c0_35, %c0_36] : memref<1x1xf32, #tpu.memory_space<vmem>>, vector<1x1xf32>
      tpu.vector_store %arg9[%c0_35, %c0_36], %66 {strides = array<i32>} : memref<1x1xf32, #tpu.memory_space<vmem>>, vector<1x1xf32>,
    } else {
    }
    %c0 = arith.constant 0 : index
    %c0_1 = arith.constant 0 : index
    %3 = vector.load %arg3[%c0, %c0_1] : memref<128x128xf32, #tpu.memory_space<vmem>>, vector<128x128xf32>
    %c0_2 = arith.constant 0 : index
    %c0_3 = arith.constant 0 : index
    %4 = vector.load %arg4[%c0_2, %c0_3] : memref<1x128xf32, #tpu.memory_space<vmem>>, vector<1x128xf32>
    %c0_4 = arith.constant 0 : index
    %c0_5 = arith.constant 0 : index
    %5 = vector.load %arg5[%c0_4, %c0_5] : memref<128x128xf32, #tpu.memory_space<vmem>>, vector<128x128xf32>
    %c0_6 = arith.constant 0 : index
    %c0_7 = arith.constant 0 : index
    %6 = vector.load %arg6[%c0_6, %c0_7] : memref<1x128xf32, #tpu.memory_space<vmem>>, vector<1x128xf32>
    %c0_8 = arith.constant 0 : index
    %c0_9 = arith.constant 0 : index
    %7 = vector.load %arg1[%c0_8, %c0_9] : memref<128x128xf32, #tpu.memory_space<vmem>>, vector<128x128xf32>
    %cst = arith.constant dense<0.000000e+00> : vector<128x128xf32>
    %8 = tpu.matmul %7, %3, %cst {dimension_numbers = #tpu.dot_dimension_numbers<[1], [0], [0], [1], [0, 0, 1, 1], [], []>} : vector<128x128xf32>, vector<128x128xf32>, vector<128x128xf32> -> vector<128x128xf32>
    %9 = vector.broadcast %4 : vector<1x128xf32> to vector<128x128xf32>
    %10 = arith.addf %8, %9 : vector<128x128xf32>
    %cst_10 = arith.constant 0.000000e+00 : f32
    %11 = vector.broadcast %cst_10 : f32 to vector<128x128xf32>
    %12 = arith.cmpf ogt, %10, %11 : vector<128x128xf32>
    %cst_11 = arith.constant 0.000000e+00 : f32
    %13 = vector.broadcast %cst_11 : f32 to vector<128x128xf32>
    %14 = arith.minimumf %10, %13 : vector<128x128xf32>
    %15 = math.exp %14 : vector<128x128xf32>
    %cst_12 = arith.constant 1.000000e+00 : f32
    %16 = vector.broadcast %cst_12 : f32 to vector<128x128xf32>
    %17 = arith.subf %15, %16 : vector<128x128xf32>
    %18 = arith.select %12, %10, %17 : vector<128x128xi1>, vector<128x128xf32>
    %cst_13 = arith.constant dense<0.000000e+00> : vector<128x128xf32>
    %19 = tpu.matmul %18, %5, %cst_13 {dimension_numbers = #tpu.dot_dimension_numbers<[1], [0], [0], [1], [0, 0, 1, 1], [], []>} : vector<128x128xf32>, vector<128x128xf32>, vector<128x128xf32> -> vector<128x128xf32>
    %20 = vector.broadcast %6 : vector<1x128xf32> to vector<128x128xf32>
    %21 = arith.addf %19, %20 : vector<128x128xf32>
    %22 = arith.mulf %21, %21 : vector<128x128xf32>
    %cst_14 = arith.constant dense<0.000000e+00> : vector<128xf32>
    %23 = vector.multi_reduction <add>, %22, %cst_14 [1] : vector<128x128xf32> to vector<128xf32>
    %24 = vector.shape_cast %23 : vector<128xf32> to vector<128x1xf32>
    %cst_15 = arith.constant 1.000000e-24 : f32
    %25 = vector.broadcast %cst_15 : f32 to vector<128x1xf32>
    %26 = arith.maximumf %24, %25 : vector<128x1xf32>
    %27 = math.rsqrt %26 : vector<128x1xf32>
    %28 = vector.broadcast %27 : vector<128x1xf32> to vector<128x128xf32>
    %29 = arith.mulf %21, %28 : vector<128x128xf32>
    %c0_16 = arith.constant 0 : index
    %c0_17 = arith.constant 0 : index
    %30 = vector.load %arg2[%c0_16, %c0_17] : memref<128x128xf32, #tpu.memory_space<vmem>>, vector<128x128xf32>
    %cst_18 = arith.constant dense<0.000000e+00> : vector<128x128xf32>
    %31 = tpu.matmul %30, %3, %cst_18 {dimension_numbers = #tpu.dot_dimension_numbers<[1], [0], [0], [1], [0, 0, 1, 1], [], []>} : vector<128x128xf32>, vector<128x128xf32>, vector<128x128xf32> -> vector<128x128xf32>
    %32 = vector.broadcast %4 : vector<1x128xf32> to vector<128x128xf32>
    %33 = arith.addf %31, %32 : vector<128x128xf32>
    %cst_19 = arith.constant 0.000000e+00 : f32
    %34 = vector.broadcast %cst_19 : f32 to vector<128x128xf32>
    %35 = arith.cmpf ogt, %33, %34 : vector<128x128xf32>
    %cst_20 = arith.constant 0.000000e+00 : f32
    %36 = vector.broadcast %cst_20 : f32 to vector<128x128xf32>
    %37 = arith.minimumf %33, %36 : vector<128x128xf32>
    %38 = math.exp %37 : vector<128x128xf32>
    %cst_21 = arith.constant 1.000000e+00 : f32
    %39 = vector.broadcast %cst_21 : f32 to vector<128x128xf32>
    %40 = arith.subf %38, %39 : vector<128x128xf32>
    %41 = arith.select %35, %33, %40 : vector<128x128xi1>, vector<128x128xf32>
    %cst_22 = arith.constant dense<0.000000e+00> : vector<128x128xf32>
    %42 = tpu.matmul %41, %5, %cst_22 {dimension_numbers = #tpu.dot_dimension_numbers<[1], [0], [0], [1], [0, 0, 1, 1], [], []>} : vector<128x128xf32>, vector<128x128xf32>, vector<128x128xf32> -> vector<128x128xf32>
    %43 = vector.broadcast %6 : vector<1x128xf32> to vector<128x128xf32>
    %44 = arith.addf %42, %43 : vector<128x128xf32>
    %45 = arith.mulf %44, %44 : vector<128x128xf32>
    %cst_23 = arith.constant dense<0.000000e+00> : vector<128xf32>
    %46 = vector.multi_reduction <add>, %45, %cst_23 [1] : vector<128x128xf32> to vector<128xf32>
    %47 = vector.shape_cast %46 : vector<128xf32> to vector<128x1xf32>
    %cst_24 = arith.constant 1.000000e-24 : f32
    %48 = vector.broadcast %cst_24 : f32 to vector<128x1xf32>
    %49 = arith.maximumf %47, %48 : vector<128x1xf32>
    %50 = math.rsqrt %49 : vector<128x1xf32>
    %51 = vector.broadcast %50 : vector<128x1xf32> to vector<128x128xf32>
    %52 = arith.mulf %44, %51 : vector<128x128xf32>
    %53 = arith.truncf %29 : vector<128x128xf32> to vector<128x128xbf16>
    %c0_25 = arith.constant 0 : index
    %c0_26 = arith.constant 0 : index
    %54 = vector.load %arg7[%c0_25, %c0_26] : memref<128x128xbf16, #tpu.memory_space<vmem>>, vector<128x128xbf16>
    tpu.vector_store %arg7[%c0_25, %c0_26], %53 {strides = array<i32>} : memref<128x128xbf16, #tpu.memory_space<vmem>>, vector<128x128xbf16>,
    %55 = arith.truncf %52 : vector<128x128xf32> to vector<128x128xbf16>
    %c0_27 = arith.constant 0 : index
    %c0_28 = arith.constant 0 : index
    %56 = vector.load %arg8[%c0_27, %c0_28] : memref<128x128xbf16, #tpu.memory_space<vmem>>, vector<128x128xbf16>
    tpu.vector_store %arg8[%c0_27, %c0_28], %55 {strides = array<i32>} : memref<128x128xbf16, #tpu.memory_space<vmem>>, vector<128x128xbf16>,
    %c0_29 = arith.constant 0 : index
    %c0_30 = arith.constant 0 : index
    %57 = vector.load %arg9[%c0_29, %c0_30] : memref<1x1xf32, #tpu.memory_space<vmem>>, vector<1x1xf32>
    %58 = arith.mulf %29, %52 : vector<128x128xf32>
    %59 = vector.shape_cast %58 : vector<128x128xf32> to vector<1x128x128xf32>
    %cst_31 = arith.constant dense<0.000000e+00> : vector<1xf32>
    %60 = vector.multi_reduction <add>, %59, %cst_31 [1, 2] : vector<1x128x128xf32> to vector<1xf32>
    %61 = vector.shape_cast %60 : vector<1xf32> to vector<1x1x1xf32>
    %62 = vector.extract %61[0, 0, 0] : f32 from vector<1x1x1xf32>
    %63 = vector.broadcast %62 : f32 to vector<1x1xf32>
    %64 = arith.addf %57, %63 : vector<1x1xf32>
    %c0_32 = arith.constant 0 : index
    %c0_33 = arith.constant 0 : index
    %65 = vector.load %arg9[%c0_32, %c0_33] : memref<1x1xf32, #tpu.memory_space<vmem>>, vector<1x1xf32>
    tpu.vector_store %arg9[%c0_32, %c0_33], %64 {strides = array<i32>} : memref<1x1xf32, #tpu.memory_space<vmem>>, vector<1x1xf32>,
    return
  }
  func.func @transform_0(%arg0: i32) -> (i32, i32) {
    %c0_i32 = arith.constant 0 : i32
    %c0_i32_0 = arith.constant 0 : i32
    return %arg0, %c0_i32 : i32, i32
  }
  func.func @transform_1(%arg0: i32) -> (i32, i32) {
    %c0_i32 = arith.constant 0 : i32
    %c0_i32_0 = arith.constant 0 : i32
    return %arg0, %c0_i32 : i32, i32
  }
  func.func @transform_2(%arg0: i32) -> (i32, i32) {
    %c0_i32 = arith.constant 0 : i32
    %c0_i32_0 = arith.constant 0 : i32
    %c0_i32_1 = arith.constant 0 : i32
    return %c0_i32, %c0_i32_0 : i32, i32
  }
  func.func @transform_3(%arg0: i32) -> (i32, i32) {
    %c0_i32 = arith.constant 0 : i32
    %c0_i32_0 = arith.constant 0 : i32
    %c0_i32_1 = arith.constant 0 : i32
    return %c0_i32, %c0_i32_0 : i32, i32
  }
  func.func @transform_4(%arg0: i32) -> (i32, i32) {
    %c0_i32 = arith.constant 0 : i32
    %c0_i32_0 = arith.constant 0 : i32
    %c0_i32_1 = arith.constant 0 : i32
    return %c0_i32, %c0_i32_0 : i32, i32
  }
  func.func @transform_5(%arg0: i32) -> (i32, i32) {
    %c0_i32 = arith.constant 0 : i32
    %c0_i32_0 = arith.constant 0 : i32
    %c0_i32_1 = arith.constant 0 : i32
    return %c0_i32, %c0_i32_0 : i32, i32
  }
  func.func @transform_6(%arg0: i32) -> (i32, i32) {
    %c0_i32 = arith.constant 0 : i32
    %c0_i32_0 = arith.constant 0 : i32
    return %arg0, %c0_i32 : i32, i32
  }
  func.func @transform_7(%arg0: i32) -> (i32, i32) {
    %c0_i32 = arith.constant 0 : i32
    %c0_i32_0 = arith.constant 0 : i32
    return %arg0, %c0_i32 : i32, i32
  }
  func.func @transform_8(%arg0: i32) -> (i32, i32) {
    %c0_i32 = arith.constant 0 : i32
    %c0_i32_0 = arith.constant 0 : i32
    %c0_i32_1 = arith.constant 0 : i32
    return %c0_i32, %c0_i32_0 : i32, i32
  }
}

</mosaic_0001>

<bundles_post_ra>
// kernel: tpu_custom_call.1
= control target key start
LH: loop header
LB: loop body
LE: loop exit
PB: predicated region body
PF: predicated region fallthrough
CT: control target
= control target key end

     0   :  { %s3256_s0 = inlined_call_operand.hbm [shape: f32[256,128], index: 0, kind: input, shape index: {}]   ;;  %s3257_s1 = inlined_call_operand.hbm [shape: f32[256,128], index: 1, kind: input, shape index: {}]   ;;  %s3258_s2 = inlined_call_operand.hbm [shape: f32[128,128], index: 2, kind: input, shape index: {}]   ;;  %s3259_s3 = inlined_call_operand.vmem [shape: f32[1,128], index: 3, kind: input, shape index: {}]   ;;  %s3260_s4 = inlined_call_operand.hbm [shape: f32[128,128], index: 4, kind: input, shape index: {}]   ;;  %s3261_s5 = inlined_call_operand.vmem [shape: f32[1,128], index: 5, kind: input, shape index: {}]   ;;  %s3262_s6 = inlined_call_operand.hbm [shape: bf16[256,128], index: 6, kind: output, shape index: {0}]   ;;  %s3263_s7 = inlined_call_operand.hbm [shape: bf16[256,128], index: 7, kind: output, shape index: {1}]   ;;  %s3264_s8 = inlined_call_operand.hbm [shape: f32[1,1], index: 8, kind: output, shape index: {2}]  }
   0x1   :  { %3275 = sst [smem:[#allocation25_spill]] %s3256_s0 }
   0x2   :  { %3276 = sst [smem:[#allocation26_spill]] %s3258_s2 }
   0x3   :  { %3277 = sst [smem:[#allocation27_spill]] %s3260_s4 }
   0x4   :  { %14 = vsyncpa [#allocation3], 0 }
   0x5   :  { %16 = vsyncpa [#allocation3 + $0x1], 0 }
   0x6   :  { %17 = vsyncpa [#allocation6], 0 }
   0x7   :  { %19 = vsyncpa [#allocation6 + $0x1], 0 }
   0x8   :  { %20 = vsyncpa [#allocation9], 0 }
   0x9   :  { %21 = vsyncpa [#allocation4], 0 }
   0xa   :  { %23 = vsyncpa [#allocation4 + $0x1], 0 }
   0xb   :  { %24 = vsyncpa [#allocation12], 0 }
   0xc   :  { %26 = vsyncpa [#allocation12 + $0x1], 0  ;;  %s2438_s27 = smov 0   ;;  %s2440_s28 = smov 0  }
   0xd   :  { %s2442_s29 = smov 0   ;;  %s2444_s30 = smov 0  }
   0xe LB: > { %3278 = sst [smem:[#allocation21_spill]] %s2379_s29  ;;  %s2459_s9 = sadd.s32 4294967295, %s2383_s30   ;;  %s2383_s30 = sphi %s2444_s30, %s3309_s30   ;;  %s2379_s29 = sphi %s2442_s29, %s3311_s29   ;;  %s2375_s28 = sphi %s2440_s28, %s3313_s28   ;;  %s2371_s27 = sphi %s2438_s27, %s3312_s27  }
   0xf   : > { %s3265_s10 = sadd.s32 4294967294, %s2383_s30   ;;  %p52_p0 = scmp.ne.s32.totalorder %s2375_s28, %s2371_s27 }
  0x10   : > { %p53_p1 = scmp.eq.s32.totalorder %s2459_s9, 0  ;;  %p3273_p2 = scmp.eq.s32.totalorder %s2459_s9, 1 }
  0x11   : > { %p192_p3 = scmp.eq.s32.totalorder %s3265_s10, 1  ;;  %p1742_p5 = scmp.ge.s32.totalorder %s2383_s30, 1 }
  0x12   : > { %p2470_p4 = por %p53_p1, %p52_p0  ;;  %p246_p7 = scmp.lt.s32.totalorder %s2383_s30, 3 }
  0x13   : > { %p2475_p6 = por %p192_p3, %p52_p0  ;;  %s3282_s2 = sld [smem:[#allocation26_spill]] }
  0x14   : > { %p2484_p9 = pnand %p1742_p5, %p246_p7  ;;  %s2385_s17 = smov [#allocation7]  }
  0x15   : > { %s3280_s12 = scalar_select %p2475_p6, 1, 0 }
  0x16   : > { %p1922_p10 = pneg %p2484_p9  ;;  %s259_s18 = sshll.u32 %s2385_s17, 4  ;;  %s260_s18 = int_to_ptr.vmem [resolvable:$true] %s259_s18 }
  0x17   : > { %3281 = sst [smem:[#allocation22_spill]] %s3280_s12  ;;  %s3266_s22 = smov 128  }
  0x18   : > { %p1923_p11 = pnand %p1922_p10, %p53_p1  ;;  %s3284_s4 = sld [smem:[#allocation27_spill]] }
  0x19   : > { %s257_s15 = sshll.u32 %s3282_s2, 4  ;;  %s3268_s23 = smov 8   ;;  %s258_s15 = int_to_ptr.hbm [resolvable:$true] %s257_s15 }
  0x1a   : > { %1925 = dma.hbm_to_vmem [thread:$0]  (!%p1923_p11), %s258_s15, 2048, %s260_s18, [#allocation6], %s3266_s22, %s3266_s22, %s3268_s23  }
  0x1b   : > { %s2388_s24 = smov [#allocation8]   ;;  %s2503_s26 = sadd.s32 1, %s2383_s30  }
  0x1c   : > { %s276_s25 = sshll.u32 %s2388_s24, 4  ;;  %3285 = sst [smem:[#allocation23_spill]] %s2503_s26  ;;  %s277_s25 = int_to_ptr.vmem [resolvable:$true] %s276_s25 }
  0x1d   : > { %s39_s13 = sadd.s32 1, %s2379_s29  ;;  %s36_s14 = ssub.s32 %s2383_s30, %s2503_s26 }
  0x1e   : > { %s274_s21 = sshll.u32 %s3284_s4, 4  ;;  %p46_p13 = scmp.ne.s32.totalorder %s2379_s29, %s2375_s28  ;;  %s275_s21 = int_to_ptr.hbm [resolvable:$true] %s274_s21 }
  0x1f   : > { %1928 = dma.hbm_to_vmem [thread:$0]  (!%p1923_p11), %s275_s21, 2048, %s277_s25, [#allocation9], %s3266_s22, %s3266_s22, %s3268_s23  }
  0x20   : > { %p37_p0 = scmp.eq.s32.totalorder %s36_s14, 0  ;;  %p47_p3 = scmp.eq.s32.totalorder %s2383_s30, 0 }
  0x21   : > { %p2513_p5 = por %p3273_p2, %p46_p13  ;;  %p1945_p7 = scmp.lt.s32.totalorder %s2383_s30, 2 }
  0x22   : > { %s2519_s15 = scalar_select %p37_p0, %s2379_s29, %s39_s13  }
  0x23   : > { %p48_p10 = por %p47_p3, %p46_p13  ;;  %s293_s18 = sand.u32 1, %s2379_s29  }
  0x24   : > { %3287 = sst [smem:[#allocation24_spill]] %s2519_s15  ;;  %s2522_s19 = sshll.u32 %s293_s18, 7 }
  0x25   : > { %s1802_s20 = sshll.u32 %s2383_s30, 7  ;;  %s3288_s0 = sld [smem:[#allocation25_spill]] }
  0x26   : > { %s297_s14 = scalar_lea.vmem [#allocation2], %s2522_s19  ;;  %p2529_p11 = pnand %p1945_p7, %p48_p10 }
  0x27   : > { %s305_s10 = sshll.u32 %s297_s14, 4  ;;  %s324_s4 = scalar_lea.hbm %s3257_s1, %s1802_s20  ;;  %s306_s10 = int_to_ptr.vmem [resolvable:$true] %s305_s10 }
  0x28   : > { %s325_s15 = sshll.u32 %s324_s4, 4  ;;  %s294_s29 = scalar_lea.sflag [#allocation3], %s293_s18  ;;  %s326_s15 = int_to_ptr.hbm [resolvable:$true] %s325_s15 }
  0x29   : > { %p2185_p0 = pneg %p2529_p11 }
  0x2b   : > { %s302_s25 = scalar_lea.hbm %s3288_s0, %s1802_s20  ;;  %s2188_s14 = scalar_lea.hbm %s3288_s0, 256 }
  0x2c   : > { %s303_s22 = sshll.u32 %s302_s25, 4  ;;  %s304_s22 = int_to_ptr.hbm [resolvable:$true] %s303_s22 }
  0x2d   : > { %s2181_s26 = sshra.s32 %s304_s22, 4  ;;  %s2182_s26 = int_to_ptr.hbm [resolvable:$true] %s2181_s26 }
  0x2e   : > { %s2183_s21 = scalar_lea.hbm %s2182_s26, 128  ;;  %p2189_p10 = scmp.lt.s32.totalorder %s2182_s26, %s3288_s0 }
  0x2f   : > { %p2184_p13 = scmp.ne.s32.totalorder %s2182_s26, %s2183_s21  ;;  %p2190_p12 = scmp.lt.s32.totalorder %s2188_s14, %s2183_s21 }
  0x31   : > { %p2186_p3 = pnand %p2185_p0, %p2184_p13  ;;  %p2191_p2 = por %p2190_p12, %p2189_p10 }
  0x33   : > { %p2187_p7 = pneg %p2186_p3 }
  0x35   : > { %p2192_p8 = pnand %p2191_p2, %p2187_p7 }
  0x37   : > { %2195 = shalt.err (!%p2192_p8)
}
  0x38   : > { %s3290_s4 = smov 8   ;;  %s3291_s18 = smov 128  }
  0x39   : > { %1932 = dma.hbm_to_vmem [thread:$0]  (!%p2529_p11), %s304_s22, 2048, %s306_s10, %s294_s29, %s3291_s18, %s3291_s18, %s3290_s4  }
  0x3a   : > { %s319_s20 = scalar_lea.vmem [#allocation5], %s2522_s19  ;;  %s315_s25 = sand.u32 1, %s2383_s30  }
  0x3b   : > { %s327_s24 = sshll.u32 %s319_s20, 4  ;;  %s316_s2 = scalar_lea.sflag [#allocation6], %s315_s25  ;;  %s328_s24 = int_to_ptr.vmem [resolvable:$true] %s327_s24 }
  0x3c   : > { %s2211_s26 = sshra.s32 %s326_s15, 4  ;;  %s2218_s0 = scalar_lea.hbm %s3257_s1, 256  ;;  %s2212_s26 = int_to_ptr.hbm [resolvable:$true] %s2211_s26 }
  0x3d   : > { %s2213_s21 = scalar_lea.hbm %s2212_s26, 128  ;;  %p2219_p13 = scmp.lt.s32.totalorder %s2212_s26, %s3257_s1 }
  0x3e   : > { %p2214_p2 = scmp.ne.s32.totalorder %s2212_s26, %s2213_s21  ;;  %p2220_p3 = scmp.lt.s32.totalorder %s2218_s0, %s2213_s21 }
  0x40   : > { %p2216_p8 = pnand %p2214_p2, %p2185_p0  ;;  %p2221_p7 = por %p2220_p3, %p2219_p13 }
  0x42   : > { %p2217_p12 = pneg %p2216_p8 }
  0x44   : > { %p2222_p10 = pnand %p2221_p7, %p2217_p12 }
  0x46   : > { %2225 = shalt.err (!%p2222_p10)
}
  0x47   : > { %1935 = dma.hbm_to_vmem [thread:$0]  (!%p2529_p11), %s326_s15, 2048, %s328_s24, %s316_s2, %s3291_s18, %s3291_s18, %s3290_s4  }
  0x48   : > { %339 = sbr.rel (%p2484_p9) target bundleno = 858 (0x35a), region = 44  ;;  %s2571_s10 = sand.u32 (!%p2484_p9), 1, %s2375_s28  }
  0x49   : > { %s1753_s12 = sshll.u32 (!%p2484_p9), %s2571_s10, 7  ;;  %s342_s0 = scalar_lea.sflag (!%p2484_p9), [#allocation3], %s2571_s10 }
  0x4a   : > { %s2575_s22 = scalar_lea.vmem (!%p2484_p9), [#allocation2], %s1753_s12 }
  0x4d   : > { %2342 = dma.done.wait (%p2470_p4), %s342_s0, 2048  }
  0x4e   : > { %2344 = vsyncadd (%p2470_p4), %s342_s0, 4294965248  ;;  %s351_s16 = sand.u32 1, %s2459_s9   ;;  %s2584_s15 = scalar_lea.vmem [#allocation5], %s1753_s12 }
  0x4f   : > { %s352_s23 = scalar_lea.sflag [#allocation6], %s351_s16 }
  0x50   : > { %2346 = dma.done.wait (%p2470_p4), %s352_s23, 2048  }
  0x51   : > { %2348 = vsyncadd (%p2470_p4), %s352_s23, 4294965248 }
  0x52   : > { %2350 = dma.done.wait (%p53_p1), [#allocation6], 2048  }
  0x53   : > { %2352 = vsyncadd (%p53_p1), [#allocation6], 4294965248 }
  0x54   : > { %2354 = dma.done.wait (%p53_p1), [#allocation9], 2048  }
  0x55   : > { %2356 = vsyncadd (%p53_p1), [#allocation9], 4294965248  ;;  %s1757_s19 = sshll.u32 %s2571_s10, 6  ;;  %p3292_p4 = scmp.ne.s32.totalorder %s2459_s9, 0 }
  0x56   : > { %s2599_s4 = scalar_lea.vmem [#allocation10], %s1757_s19  ;;  %s2601_s18 = scalar_lea.vmem [#allocation11], %s1757_s19 }
  0x57   : > { %416 = sbr.rel (%p3292_p4) target bundleno = 94 (0x5e), region = 64 }
  0x5c   : > { %vm417_vm0 = vcmask 0   ;;  %v2389_v0 = vmov 0.0  }
  0x5d   : > { %418 = vst.msk [vmem:[#allocation13] sm:$0x1] %vm417_vm0, %v2389_v0 }
  0x5e PF: > { %v434_v1 = vld [vmem:[#allocation7 + $0x78] sm:$0xff]  ;;  %v433_v2 = vld [vmem:[#allocation7 + $0x70] sm:$0xff]  ;;  %v432_v3 = vld [vmem:[#allocation7 + $0x68] sm:$0xff]  ;;  %s1804_s2 = sshll.u32 %s2459_s9, 6  ;;  %s1567_s13 = sshll.u32 %s2601_s18, 4  ;;  %s1568_s13 = int_to_ptr.vmem [resolvable:$true] %s1567_s13 }
  0x5f   : > { %472 = vmatpush.msra.mxu0 %v434_v1  ;;  %957 = vmatpush.msra.mxu2 %v434_v1  ;;  %v431_v4 = vld [vmem:[#allocation7 + $0x60] sm:$0xff]  ;;  %v430_v5 = vld [vmem:[#allocation7 + $0x58] sm:$0xff]  ;;  %v429_v6 = vld [vmem:[#allocation7 + $0x50] sm:$0xff]  ;;  %s1566_s14 = scalar_lea.hbm %s3263_s7, %s1804_s2  ;;  %s1538_s12 = scalar_lea.sflag [#allocation12], %s351_s16 }
  0x60   : > { %v428_v7 = vld [vmem:[#allocation7 + $0x48] sm:$0xff]  ;;  %v427_v8 = vld [vmem:[#allocation7 + $0x40] sm:$0xff]  ;;  %v426_v9 = vld [vmem:[#allocation7 + $0x38] sm:$0xff]  ;;  %s1569_s29 = sshll.u32 %s1566_s14, 4  ;;  %s2261_s19 = scalar_lea.hbm %s3263_s7, 128  ;;  %s1570_s29 = int_to_ptr.hbm [resolvable:$true] %s1569_s29 }
  0x61   : > { %473 = vmatpush.msra.mxu0 %v433_v2  ;;  %958 = vmatpush.msra.mxu2 %v433_v2  ;;  %v425_v10 = vld [vmem:[#allocation7 + $0x30] sm:$0xff]  ;;  %v424_v11 = vld [vmem:[#allocation7 + $0x28] sm:$0xff]  ;;  %v423_v12 = vld [vmem:[#allocation7 + $0x20] sm:$0xff]  ;;  %s2255_s0 = sshra.s32 %s1570_s29, 4  ;;  %s2256_s0 = int_to_ptr.hbm [resolvable:$true] %s2255_s0 }
  0x62   : > { %v422_v13 = vld [vmem:[#allocation7 + $0x18] sm:$0xff]  ;;  %v421_v14 = vld [vmem:[#allocation7 + $0x10] sm:$0xff]  ;;  %v420_v15 = vld [vmem:[#allocation7 + $0x8] sm:$0xff]  ;;  %p2262_p0 = scmp.lt.s32.totalorder %s2256_s0, %s3263_s7 }
  0x63   : > { %474 = vmatpush.msra.mxu0 %v432_v3  ;;  %959 = vmatpush.msra.mxu2 %v432_v3  ;;  %v419_v16 = vld [vmem:[#allocation7] sm:$0xff]  ;;  %v454_v19 = vld [vmem:[%s2575_s22 + $0x8] sm:$0xff]  ;;  %v455_v21 = vld [vmem:[%s2575_s22 + $0x10] sm:$0xff] }
  0x64   : > { %v453_v17 = vld [vmem:[%s2575_s22] sm:$0xff]  ;;  %v942_v20 = vld [vmem:[%s2584_s15 + $0x8] sm:$0xff]  ;;  %v943_v22 = vld [vmem:[%s2584_s15 + $0x10] sm:$0xff] }
  0x65   : > { %475 = vmatpush.msra.mxu0 %v431_v4  ;;  %960 = vmatpush.msra.mxu2 %v431_v4  ;;  %v941_v18 = vld [vmem:[%s2584_s15] sm:$0xff]  ;;  %v456_v23 = vld [vmem:[%s2575_s22 + $0x18] sm:$0xff]  ;;  %v458_v27 = vld [vmem:[%s2575_s22 + $0x28] sm:$0xff] }
  0x66   : > { %v944_v24 = vld [vmem:[%s2584_s15 + $0x18] sm:$0xff]  ;;  %v457_v25 = vld [vmem:[%s2575_s22 + $0x20] sm:$0xff]  ;;  %v946_v28 = vld [vmem:[%s2584_s15 + $0x28] sm:$0xff] }
  0x67   : > { %476 = vmatpush.msra.mxu0 %v430_v5  ;;  %961 = vmatpush.msra.mxu2 %v430_v5  ;;  %v945_v26 = vld [vmem:[%s2584_s15 + $0x20] sm:$0xff]  ;;  %v459_v29 = vld [vmem:[%s2575_s22 + $0x30] sm:$0xff]  ;;  %v460_v31 = vld [vmem:[%s2575_s22 + $0x38] sm:$0xff] }
  0x68   : > { %v947_v30 = vld [vmem:[%s2584_s15 + $0x30] sm:$0xff]  ;;  %v948_v32 = vld [vmem:[%s2584_s15 + $0x38] sm:$0xff]  ;;  %v461_v33 = vld [vmem:[%s2575_s22 + $0x40] sm:$0xff] }
  0x69   : > { %477 = vmatpush.msra.mxu0 %v429_v6  ;;  %962 = vmatpush.msra.mxu2 %v429_v6  ;;  %v949_v34 = vld [vmem:[%s2584_s15 + $0x40] sm:$0xff]  ;;  %v462_v35 = vld [vmem:[%s2575_s22 + $0x48] sm:$0xff]  ;;  %v451_v37 = vld [vmem:[#allocation8 + $0x78] sm:$0xff] }
  0x6a   : > { %v950_v36 = vld [vmem:[%s2584_s15 + $0x48] sm:$0xff]  ;;  %636 = vmatpush.msra.mxu1 %v451_v37  ;;  %1118 = vmatpush.msra.mxu3 %v451_v37  ;;  %v463_v38 = vld [vmem:[%s2575_s22 + $0x50] sm:$0xff]  ;;  %v448_v42 = vld [vmem:[#allocation8 + $0x60] sm:$0xff] }
  0x6b   : > { %478 = vmatpush.msra.mxu0 %v428_v7  ;;  %963 = vmatpush.msra.mxu2 %v428_v7  ;;  %v951_v39 = vld [vmem:[%s2584_s15 + $0x50] sm:$0xff]  ;;  %v449_v41 = vld [vmem:[#allocation8 + $0x68] sm:$0xff]  ;;  %v447_v43 = vld [vmem:[#allocation8 + $0x58] sm:$0xff] }
  0x6c   : > { %v450_v40 = vld [vmem:[#allocation8 + $0x70] sm:$0xff]  ;;  %v464_v44 = vld [vmem:[%s2575_s22 + $0x58] sm:$0xff]  ;;  %v445_v47 = vld [vmem:[#allocation8 + $0x48] sm:$0xff] }
  0x6d   : > { %479 = vmatpush.msra.mxu0 %v427_v8  ;;  %964 = vmatpush.msra.mxu2 %v427_v8  ;;  %v952_v45 = vld [vmem:[%s2584_s15 + $0x58] sm:$0xff]  ;;  %v446_v46 = vld [vmem:[#allocation8 + $0x50] sm:$0xff]  ;;  %v444_v48 = vld [vmem:[#allocation8 + $0x40] sm:$0xff] }
  0x6e   : > { %637 = vmatpush.msra.mxu1 %v450_v40  ;;  %1119 = vmatpush.msra.mxu3 %v450_v40  ;;  %v465_v49 = vld [vmem:[%s2575_s22 + $0x60] sm:$0xff]  ;;  %v443_v51 = vld [vmem:[#allocation8 + $0x38] sm:$0xff]  ;;  %v442_v52 = vld [vmem:[#allocation8 + $0x30] sm:$0xff] }
  0x6f   : > { %480 = vmatpush.msra.mxu0 %v426_v9  ;;  %965 = vmatpush.msra.mxu2 %v426_v9  ;;  %v953_v50 = vld [vmem:[%s2584_s15 + $0x60] sm:$0xff]  ;;  %v441_v53 = vld [vmem:[#allocation8 + $0x28] sm:$0xff]  ;;  %v439_v57 = vld [vmem:[#allocation8 + $0x18] sm:$0xff] }
  0x70   : > { %638 = vmatpush.msra.mxu1 %v449_v41  ;;  %1120 = vmatpush.msra.mxu3 %v449_v41  ;;  %v440_v54 = vld [vmem:[#allocation8 + $0x20] sm:$0xff]  ;;  %v466_v55 = vld [vmem:[%s2575_s22 + $0x68] sm:$0xff]  ;;  %v438_v58 = vld [vmem:[#allocation8 + $0x10] sm:$0xff] }
  0x71   : > { %481 = vmatpush.msra.mxu0 %v425_v10  ;;  %966 = vmatpush.msra.mxu2 %v425_v10  ;;  %v954_v56 = vld [vmem:[%s2584_s15 + $0x68] sm:$0xff]  ;;  %v436_v60 = vld [vmem:[#allocation8] sm:$0xff]  ;;  %v467_v61 = vld [vmem:[%s2575_s22 + $0x70] sm:$0xff] }
  0x72   : > { %639 = vmatpush.msra.mxu1 %v448_v42  ;;  %1121 = vmatpush.msra.mxu3 %v448_v42  ;;  %v437_v59 = vld [vmem:[#allocation8 + $0x8] sm:$0xff]  ;;  %v955_v62 = vld [vmem:[%s2584_s15 + $0x70] sm:$0xff]  ;;  %v468_v63 = vld [vmem:[%s2575_s22 + $0x78] sm:$0xff]  ;;  %s2257_s22 = scalar_lea.hbm %s2256_s0, 64 }
  0x73   : > { %482 = vmatpush.msra.mxu0 %v424_v11  ;;  %967 = vmatpush.msra.mxu2 %v424_v11  ;;  %v956_v0 = vld [vmem:[%s2584_s15 + $0x78] sm:$0xff]  ;;  %v2640_v1 = vld [vmem:[%s3259_s3] ss:$0 sm:$0xff]  ;;  %p2258_p1 = scmp.ne.s32.totalorder %s2256_s0, %s2257_s22  ;;  %p2263_p2 = scmp.lt.s32.totalorder %s2261_s19, %s2257_s22 }
  0x74   : > { %640 = vmatpush.msra.mxu1 %v447_v43  ;;  %1122 = vmatpush.msra.mxu3 %v447_v43 }
  0x75   : > { %483 = vmatpush.msra.mxu0 %v423_v12  ;;  %968 = vmatpush.msra.mxu2 %v423_v12  ;;  %p2259_p9 = pnand %p2258_p1, %p2513_p5  ;;  %p2264_p8 = por %p2263_p2, %p2262_p0 }
  0x76   : > { %641 = vmatpush.msra.mxu1 %v446_v46  ;;  %1123 = vmatpush.msra.mxu3 %v446_v46 }
  0x77   : > { %484 = vmatpush.msra.mxu0 %v422_v13  ;;  %969 = vmatpush.msra.mxu2 %v422_v13  ;;  %p2260_p11 = pneg %p2259_p9 }
  0x78   : > { %642 = vmatpush.msra.mxu1 %v445_v47  ;;  %1124 = vmatpush.msra.mxu3 %v445_v47 }
  0x79   : > { %485 = vmatpush.msra.mxu0 %v421_v14  ;;  %970 = vmatpush.msra.mxu2 %v421_v14  ;;  %p2265_p12 = pnand %p2264_p8, %p2260_p11 }
  0x7a   : > { %643 = vmatpush.msra.mxu1 %v444_v48  ;;  %1125 = vmatpush.msra.mxu3 %v444_v48 }
  0x7b   : > { %486 = vmatpush.msra.mxu0 %v420_v15  ;;  %971 = vmatpush.msra.mxu2 %v420_v15 }
  0x7c   : > { %644 = vmatpush.msra.mxu1 %v443_v51  ;;  %1126 = vmatpush.msra.mxu3 %v443_v51 }
  0x7d   : > { %487 = vmatpush.msra.mxu0 %v419_v16  ;;  %972 = vmatpush.msra.mxu2 %v419_v16 }
  0x7e   : > { %488 = vmatmul.f32.vlgmr.msra.gmra.mxu0 %v453_v17  ;;  %973 = vmatmul.f32.vlgmr.msra.gmra.mxu2 %v941_v18 }
  0x7f   : > { %645 = vmatpush.msra.mxu1 %v442_v52  ;;  %1127 = vmatpush.msra.mxu3 %v442_v52 }
  0x81   : > { %646 = vmatpush.msra.mxu1 %v441_v53  ;;  %1128 = vmatpush.msra.mxu3 %v441_v53 }
  0x83   : > { %647 = vmatpush.msra.mxu1 %v440_v54  ;;  %1129 = vmatpush.msra.mxu3 %v440_v54 }
  0x85   : > { %648 = vmatpush.msra.mxu1 %v439_v57  ;;  %1130 = vmatpush.msra.mxu3 %v439_v57 }
  0x86   : > { %491 = vmatmul.f32.gmra.mxu0 %v454_v19  ;;  %976 = vmatmul.f32.gmra.mxu2 %v942_v20 }
  0x87   : > { %649 = vmatpush.msra.mxu1 %v438_v58  ;;  %1131 = vmatpush.msra.mxu3 %v438_v58 }
  0x89   : > { %650 = vmatpush.msra.mxu1 %v437_v59  ;;  %1132 = vmatpush.msra.mxu3 %v437_v59 }
  0x8b   : > { %651 = vmatpush.msra.mxu1 %v436_v60  ;;  %1133 = vmatpush.msra.mxu3 %v436_v60 }
  0x8e   : > { %494 = vmatmul.f32.gmra.mxu0 %v455_v21  ;;  %979 = vmatmul.f32.gmra.mxu2 %v943_v22 }
  0x96   : > { %497 = vmatmul.f32.gmra.mxu0 %v456_v23  ;;  %982 = vmatmul.f32.gmra.mxu2 %v944_v24 }
  0x9e   : > { %500 = vmatmul.f32.gmra.mxu0 %v457_v25  ;;  %985 = vmatmul.f32.gmra.mxu2 %v945_v26 }
  0xa6   : > { %503 = vmatmul.f32.gmra.mxu0 %v458_v27  ;;  %988 = vmatmul.f32.gmra.mxu2 %v946_v28 }
  0xae   : > { %506 = vmatmul.f32.gmra.mxu0 %v459_v29  ;;  %991 = vmatmul.f32.gmra.mxu2 %v947_v30 }
  0xb6   : > { %509 = vmatmul.f32.gmra.mxu0 %v460_v31  ;;  %994 = vmatmul.f32.gmra.mxu2 %v948_v32 }
  0xbe   : > { %512 = vmatmul.f32.gmra.mxu0 %v461_v33  ;;  %997 = vmatmul.f32.gmra.mxu2 %v949_v34 }
  0xc6   : > { %515 = vmatmul.f32.gmra.mxu0 %v462_v35  ;;  %1000 = vmatmul.f32.gmra.mxu2 %v950_v36 }
  0xce   : > { %518 = vmatmul.f32.gmra.mxu0 %v463_v38  ;;  %1003 = vmatmul.f32.gmra.mxu2 %v951_v39 }
  0xd6   : > { %521 = vmatmul.f32.gmra.mxu0 %v464_v44  ;;  %1006 = vmatmul.f32.gmra.mxu2 %v952_v45 }
  0xde   : > { %524 = vmatmul.f32.gmra.mxu0 %v465_v49  ;;  %1009 = vmatmul.f32.gmra.mxu2 %v953_v50 }
  0xe6   : > { %527 = vmatmul.f32.gmra.mxu0 %v466_v55  ;;  %1012 = vmatmul.f32.gmra.mxu2 %v954_v56 }
  0xee   : > { %530 = vmatmul.f32.gmra.mxu0 %v467_v61  ;;  %1015 = vmatmul.f32.gmra.mxu2 %v955_v62 }
  0xf6   : > { %533 = vmatmul.f32.gmra.mxu0 %v468_v63  ;;  %1018 = vmatmul.f32.gmra.mxu2 %v956_v0 }
  0xfb   : > { %v489_v2 = vpop.f32.mrf.mxu0 }
  0xfc   : > { %v490_v3 = vadd.f32 %v2640_v1, %v489_v2 }
  0xfe   : > { %v553_v4 = vmin.f32 %v490_v3, 0.0  ;;  %vm537_vm1 = vcmp.gt.f32.partialorder %v490_v3, 0.0 }
 0x100   : > { %v569_v5 = vmul.f32 1.442695, %v553_v4 }
 0x101   : > { %v974_v6 = vpop.f32.mrf.mxu2 }
 0x102   : > { %1993 = vpow2.f32 %v569_v5  ;;  %v975_v7 = vadd.f32 %v2640_v1, %v974_v6 }
 0x103   : > { %v492_v8 = vpop.f32.mrf.mxu0 }
 0x104   : > { %v1038_v9 = vmin.f32 %v975_v7, 0.0  ;;  %v493_v10 = vadd.f32 %v2640_v1, %v492_v8  ;;  %vm1022_vm2 = vcmp.gt.f32.partialorder %v975_v7, 0.0 }
 0x106   : > { %v1054_v11 = vmul.f32 1.442695, %v1038_v9  ;;  %v554_v12 = vmin.f32 %v493_v10, 0.0  ;;  %vm538_vm3 = vcmp.gt.f32.partialorder %v493_v10, 0.0 }
 0x108   : > { %v1994_v13 = vpop.eup %1993  ;;  %1995 = vpow2.f32 %v1054_v11  ;;  %v571_v14 = vmul.f32 1.442695, %v554_v12 }
 0x109   : > { %v977_v15 = vpop.f32.mrf.mxu2  ;;  %v1760_v16 = vadd.f32 -1.0, %v1994_v13 }
 0x10a   : > { %1997 = vpow2.f32 %v571_v14  ;;  %v978_v17 = vadd.f32 %v2640_v1, %v977_v15 }
 0x10b   : > { %v495_v18 = vpop.f32.mrf.mxu0  ;;  %v617_v19 = vsel %vm537_vm1, %v490_v3, %v1760_v16 }
 0x10c   : > { %v1039_v20 = vmin.f32 %v978_v17, 0.0  ;;  %v496_v21 = vadd.f32 %v2640_v1, %v495_v18  ;;  %652 = vmatmul.f32.vlgmr.msra.gmra.mxu1 %v617_v19  ;;  %vm1023_vm4 = vcmp.gt.f32.partialorder %v978_v17, 0.0 }
 0x10e   : > { %v1996_v22 = vpop.eup %1995  ;;  %v1056_v23 = vmul.f32 1.442695, %v1039_v20  ;;  %v555_v24 = vmin.f32 %v496_v21, 0.0  ;;  %vm539_vm5 = vcmp.gt.f32.partialorder %v496_v21, 0.0 }
 0x10f   : > { %v1776_v25 = vadd.f32 -1.0, %v1996_v22 }
 0x110   : > { %v1998_v26 = vpop.eup %1997  ;;  %1999 = vpow2.f32 %v1056_v23  ;;  %v573_v27 = vmul.f32 1.442695, %v555_v24 }
 0x111   : > { %v980_v28 = vpop.f32.mrf.mxu2  ;;  %v1102_v29 = vsel %vm1022_vm2, %v975_v7, %v1776_v25  ;;  %v1761_v30 = vadd.f32 -1.0, %v1998_v26 }
 0x112   : > { %2001 = vpow2.f32 %v573_v27  ;;  %v981_v31 = vadd.f32 %v2640_v1, %v980_v28  ;;  %1134 = vmatmul.f32.vlgmr.msra.gmra.mxu3 %v1102_v29 }
 0x113   : > { %v498_v32 = vpop.f32.mrf.mxu0  ;;  %v618_v33 = vsel %vm538_vm3, %v493_v10, %v1761_v30 }
 0x114   : > { %v1040_v34 = vmin.f32 %v981_v31, 0.0  ;;  %v499_v35 = vadd.f32 %v2640_v1, %v498_v32  ;;  %655 = vmatmul.f32.gmra.mxu1 %v618_v33  ;;  %vm1024_vm6 = vcmp.gt.f32.partialorder %v981_v31, 0.0 }
 0x116   : > { %v2000_v36 = vpop.eup %1999  ;;  %v1058_v37 = vmul.f32 1.442695, %v1040_v34  ;;  %v556_v38 = vmin.f32 %v499_v35, 0.0  ;;  %vm540_vm7 = vcmp.gt.f32.partialorder %v499_v35, 0.0 }
 0x117   : > { %v1777_v39 = vadd.f32 -1.0, %v2000_v36 }
 0x118   : > { %v2002_v40 = vpop.eup %2001  ;;  %2003 = vpow2.f32 %v1058_v37  ;;  %v575_v41 = vmul.f32 1.442695, %v556_v38 }
 0x119   : > { %v983_v42 = vpop.f32.mrf.mxu2  ;;  %v1103_v43 = vsel %vm1023_vm4, %v978_v17, %v1777_v39  ;;  %v1762_v44 = vadd.f32 -1.0, %v2002_v40 }
 0x11a   : > { %2005 = vpow2.f32 %v575_v41  ;;  %v984_v45 = vadd.f32 %v2640_v1, %v983_v42  ;;  %1137 = vmatmul.f32.gmra.mxu3 %v1103_v43 }
 0x11b   : > { %v501_v46 = vpop.f32.mrf.mxu0  ;;  %v619_v47 = vsel %vm539_vm5, %v496_v21, %v1762_v44 }
 0x11c   : > { %v1041_v48 = vmin.f32 %v984_v45, 0.0  ;;  %v502_v49 = vadd.f32 %v2640_v1, %v501_v46  ;;  %658 = vmatmul.f32.gmra.mxu1 %v619_v47  ;;  %vm1025_vm8 = vcmp.gt.f32.partialorder %v984_v45, 0.0 }
 0x11e   : > { %v2004_v50 = vpop.eup %2003  ;;  %v1060_v51 = vmul.f32 1.442695, %v1041_v48  ;;  %v557_v52 = vmin.f32 %v502_v49, 0.0  ;;  %vm541_vm9 = vcmp.gt.f32.partialorder %v502_v49, 0.0 }
 0x11f   : > { %v1778_v53 = vadd.f32 -1.0, %v2004_v50 }
 0x120   : > { %v2006_v54 = vpop.eup %2005  ;;  %2007 = vpow2.f32 %v1060_v51  ;;  %v577_v55 = vmul.f32 1.442695, %v557_v52 }
 0x121   : > { %v986_v56 = vpop.f32.mrf.mxu2  ;;  %v1104_v57 = vsel %vm1024_vm6, %v981_v31, %v1778_v53  ;;  %v1763_v58 = vadd.f32 -1.0, %v2006_v54 }
 0x122   : > { %2009 = vpow2.f32 %v577_v55  ;;  %v987_v59 = vadd.f32 %v2640_v1, %v986_v56  ;;  %1140 = vmatmul.f32.gmra.mxu3 %v1104_v57 }
 0x123   : > { %v504_v60 = vpop.f32.mrf.mxu0  ;;  %v620_v61 = vsel %vm540_vm7, %v499_v35, %v1763_v58 }
 0x124   : > { %v1042_v62 = vmin.f32 %v987_v59, 0.0  ;;  %v505_v63 = vadd.f32 %v2640_v1, %v504_v60  ;;  %661 = vmatmul.f32.gmra.mxu1 %v620_v61  ;;  %vm1026_vm10 = vcmp.gt.f32.partialorder %v987_v59, 0.0 }
 0x126   : > { %v2008_v0 = vpop.eup %2007  ;;  %v1062_v2 = vmul.f32 1.442695, %v1042_v62  ;;  %v558_v3 = vmin.f32 %v505_v63, 0.0  ;;  %vm542_vm11 = vcmp.gt.f32.partialorder %v505_v63, 0.0 }
 0x127   : > { %v1779_v4 = vadd.f32 -1.0, %v2008_v0 }
 0x128   : > { %v2010_v5 = vpop.eup %2009  ;;  %2011 = vpow2.f32 %v1062_v2  ;;  %v579_v6 = vmul.f32 1.442695, %v558_v3 }
 0x129   : > { %v989_v7 = vpop.f32.mrf.mxu2  ;;  %v1105_v8 = vsel %vm1025_vm8, %v984_v45, %v1779_v4  ;;  %v1764_v9 = vadd.f32 -1.0, %v2010_v5 }
 0x12a   : > { %2013 = vpow2.f32 %v579_v6  ;;  %v990_v10 = vadd.f32 %v2640_v1, %v989_v7  ;;  %1143 = vmatmul.f32.gmra.mxu3 %v1105_v8 }
 0x12b   : > { %v507_v11 = vpop.f32.mrf.mxu0  ;;  %v621_v12 = vsel %vm541_vm9, %v502_v49, %v1764_v9 }
 0x12c   : > { %v1043_v13 = vmin.f32 %v990_v10, 0.0  ;;  %v508_v14 = vadd.f32 %v2640_v1, %v507_v11  ;;  %664 = vmatmul.f32.gmra.mxu1 %v621_v12  ;;  %vm1027_vm12 = vcmp.gt.f32.partialorder %v990_v10, 0.0 }
 0x12e   : > { %v2012_v15 = vpop.eup %2011  ;;  %v1064_v16 = vmul.f32 1.442695, %v1043_v13  ;;  %v559_v17 = vmin.f32 %v508_v14, 0.0  ;;  %vm543_vm13 = vcmp.gt.f32.partialorder %v508_v14, 0.0 }
 0x12f   : > { %v1780_v18 = vadd.f32 -1.0, %v2012_v15 }
 0x130   : > { %v2014_v19 = vpop.eup %2013  ;;  %2015 = vpow2.f32 %v1064_v16  ;;  %v581_v20 = vmul.f32 1.442695, %v559_v17 }
 0x131   : > { %v992_v21 = vpop.f32.mrf.mxu2  ;;  %v1106_v22 = vsel %vm1026_vm10, %v987_v59, %v1780_v18  ;;  %v1765_v23 = vadd.f32 -1.0, %v2014_v19 }
 0x132   : > { %2017 = vpow2.f32 %v581_v20  ;;  %v993_v24 = vadd.f32 %v2640_v1, %v992_v21  ;;  %1146 = vmatmul.f32.gmra.mxu3 %v1106_v22 }
 0x133   : > { %v510_v25 = vpop.f32.mrf.mxu0  ;;  %v622_v26 = vsel %vm542_vm11, %v505_v63, %v1765_v23 }
 0x134   : > { %v1044_v27 = vmin.f32 %v993_v24, 0.0  ;;  %v511_v28 = vadd.f32 %v2640_v1, %v510_v25  ;;  %667 = vmatmul.f32.gmra.mxu1 %v622_v26  ;;  %vm1028_vm14 = vcmp.gt.f32.partialorder %v993_v24, 0.0 }
 0x136   : > { %v2016_v29 = vpop.eup %2015  ;;  %v1066_v30 = vmul.f32 1.442695, %v1044_v27  ;;  %v560_v31 = vmin.f32 %v511_v28, 0.0  ;;  %vm544_vm15 = vcmp.gt.f32.partialorder %v511_v28, 0.0 }
 0x137   : > { %v1781_v32 = vadd.f32 -1.0, %v2016_v29 }
 0x138   : > { %v2018_v33 = vpop.eup %2017  ;;  %2019 = vpow2.f32 %v1066_v30  ;;  %v583_v34 = vmul.f32 1.442695, %v560_v31 }
 0x139   : > { %v995_v35 = vpop.f32.mrf.mxu2  ;;  %v1107_v36 = vsel %vm1027_vm12, %v990_v10, %v1781_v32  ;;  %v1766_v37 = vadd.f32 -1.0, %v2018_v33 }
 0x13a   : > { %2021 = vpow2.f32 %v583_v34  ;;  %v996_v38 = vadd.f32 %v2640_v1, %v995_v35  ;;  %1149 = vmatmul.f32.gmra.mxu3 %v1107_v36 }
 0x13b   : > { %v513_v39 = vpop.f32.mrf.mxu0  ;;  %v623_v40 = vsel %vm543_vm13, %v508_v14, %v1766_v37 }
 0x13c   : > { %v1045_v41 = vmin.f32 %v996_v38, 0.0  ;;  %v514_v42 = vadd.f32 %v2640_v1, %v513_v39  ;;  %670 = vmatmul.f32.gmra.mxu1 %v623_v40  ;;  %vm1029_vm0 = vcmp.gt.f32.partialorder %v996_v38, 0.0 }
 0x13e   : > { %v2020_v43 = vpop.eup %2019  ;;  %v1068_v44 = vmul.f32 1.442695, %v1045_v41  ;;  %v561_v45 = vmin.f32 %v514_v42, 0.0  ;;  %vm545_vm1 = vcmp.gt.f32.partialorder %v514_v42, 0.0 }
 0x13f   : > { %v1782_v46 = vadd.f32 -1.0, %v2020_v43 }
 0x140   : > { %v2022_v47 = vpop.eup %2021  ;;  %2023 = vpow2.f32 %v1068_v44  ;;  %v585_v48 = vmul.f32 1.442695, %v561_v45 }
 0x141   : > { %v998_v49 = vpop.f32.mrf.mxu2  ;;  %v1108_v50 = vsel %vm1028_vm14, %v993_v24, %v1782_v46  ;;  %v1767_v51 = vadd.f32 -1.0, %v2022_v47 }
 0x142   : > { %2025 = vpow2.f32 %v585_v48  ;;  %v999_v52 = vadd.f32 %v2640_v1, %v998_v49  ;;  %1152 = vmatmul.f32.gmra.mxu3 %v1108_v50 }
 0x143   : > { %v516_v53 = vpop.f32.mrf.mxu0  ;;  %v624_v54 = vsel %vm544_vm15, %v511_v28, %v1767_v51 }
 0x144   : > { %v1046_v55 = vmin.f32 %v999_v52, 0.0  ;;  %v517_v56 = vadd.f32 %v2640_v1, %v516_v53  ;;  %673 = vmatmul.f32.gmra.mxu1 %v624_v54  ;;  %vm1030_vm2 = vcmp.gt.f32.partialorder %v999_v52, 0.0 }
 0x146   : > { %v2024_v57 = vpop.eup %2023  ;;  %v1070_v58 = vmul.f32 1.442695, %v1046_v55  ;;  %v562_v59 = vmin.f32 %v517_v56, 0.0  ;;  %vm546_vm3 = vcmp.gt.f32.partialorder %v517_v56, 0.0 }
 0x147   : > { %v1783_v60 = vadd.f32 -1.0, %v2024_v57 }
 0x148   : > { %v2026_v61 = vpop.eup %2025  ;;  %2027 = vpow2.f32 %v1070_v58  ;;  %v587_v62 = vmul.f32 1.442695, %v562_v59 }
 0x149   : > { %v1001_v63 = vpop.f32.mrf.mxu2  ;;  %v1109_v0 = vsel %vm1029_vm0, %v996_v38, %v1783_v60  ;;  %v1768_v2 = vadd.f32 -1.0, %v2026_v61 }
 0x14a   : > { %2029 = vpow2.f32 %v587_v62  ;;  %v1002_v3 = vadd.f32 %v2640_v1, %v1001_v63  ;;  %1155 = vmatmul.f32.gmra.mxu3 %v1109_v0 }
 0x14b   : > { %v519_v4 = vpop.f32.mrf.mxu0  ;;  %v625_v5 = vsel %vm545_vm1, %v514_v42, %v1768_v2 }
 0x14c   : > { %v1047_v6 = vmin.f32 %v1002_v3, 0.0  ;;  %v520_v7 = vadd.f32 %v2640_v1, %v519_v4  ;;  %676 = vmatmul.f32.gmra.mxu1 %v625_v5  ;;  %vm1031_vm4 = vcmp.gt.f32.partialorder %v1002_v3, 0.0 }
 0x14e   : > { %v2028_v8 = vpop.eup %2027  ;;  %v1072_v9 = vmul.f32 1.442695, %v1047_v6  ;;  %v563_v10 = vmin.f32 %v520_v7, 0.0  ;;  %vm547_vm5 = vcmp.gt.f32.partialorder %v520_v7, 0.0 }
 0x14f   : > { %v1784_v11 = vadd.f32 -1.0, %v2028_v8 }
 0x150   : > { %v2030_v12 = vpop.eup %2029  ;;  %2031 = vpow2.f32 %v1072_v9  ;;  %v589_v13 = vmul.f32 1.442695, %v563_v10 }
 0x151   : > { %v1004_v14 = vpop.f32.mrf.mxu2  ;;  %v1110_v15 = vsel %vm1030_vm2, %v999_v52, %v1784_v11  ;;  %v1769_v16 = vadd.f32 -1.0, %v2030_v12 }
 0x152   : > { %2033 = vpow2.f32 %v589_v13  ;;  %v1005_v17 = vadd.f32 %v2640_v1, %v1004_v14  ;;  %1158 = vmatmul.f32.gmra.mxu3 %v1110_v15 }
 0x153   : > { %v522_v18 = vpop.f32.mrf.mxu0  ;;  %v626_v19 = vsel %vm546_vm3, %v517_v56, %v1769_v16 }
 0x154   : > { %v1048_v20 = vmin.f32 %v1005_v17, 0.0  ;;  %v523_v21 = vadd.f32 %v2640_v1, %v522_v18  ;;  %679 = vmatmul.f32.gmra.mxu1 %v626_v19  ;;  %vm1032_vm6 = vcmp.gt.f32.partialorder %v1005_v17, 0.0 }
 0x156   : > { %v2032_v22 = vpop.eup %2031  ;;  %v1074_v23 = vmul.f32 1.442695, %v1048_v20  ;;  %v564_v24 = vmin.f32 %v523_v21, 0.0  ;;  %vm548_vm7 = vcmp.gt.f32.partialorder %v523_v21, 0.0 }
 0x157   : > { %v1785_v25 = vadd.f32 -1.0, %v2032_v22 }
 0x158   : > { %v2034_v26 = vpop.eup %2033  ;;  %2035 = vpow2.f32 %v1074_v23  ;;  %v591_v27 = vmul.f32 1.442695, %v564_v24 }
 0x159   : > { %v1007_v28 = vpop.f32.mrf.mxu2  ;;  %v1111_v29 = vsel %vm1031_vm4, %v1002_v3, %v1785_v25  ;;  %v1770_v30 = vadd.f32 -1.0, %v2034_v26 }
 0x15a   : > { %2037 = vpow2.f32 %v591_v27  ;;  %v1008_v31 = vadd.f32 %v2640_v1, %v1007_v28  ;;  %1161 = vmatmul.f32.gmra.mxu3 %v1111_v29 }
 0x15b   : > { %v525_v32 = vpop.f32.mrf.mxu0  ;;  %v627_v33 = vsel %vm547_vm5, %v520_v7, %v1770_v30 }
 0x15c   : > { %v1049_v34 = vmin.f32 %v1008_v31, 0.0  ;;  %v526_v35 = vadd.f32 %v2640_v1, %v525_v32  ;;  %682 = vmatmul.f32.gmra.mxu1 %v627_v33  ;;  %vm1033_vm8 = vcmp.gt.f32.partialorder %v1008_v31, 0.0 }
 0x15e   : > { %v2036_v36 = vpop.eup %2035  ;;  %v1076_v37 = vmul.f32 1.442695, %v1049_v34  ;;  %v565_v38 = vmin.f32 %v526_v35, 0.0  ;;  %vm549_vm9 = vcmp.gt.f32.partialorder %v526_v35, 0.0 }
 0x15f   : > { %v1786_v39 = vadd.f32 -1.0, %v2036_v36 }
 0x160   : > { %v2038_v40 = vpop.eup %2037  ;;  %2039 = vpow2.f32 %v1076_v37  ;;  %v593_v41 = vmul.f32 1.442695, %v565_v38 }
 0x161   : > { %v1010_v42 = vpop.f32.mrf.mxu2  ;;  %v1112_v43 = vsel %vm1032_vm6, %v1005_v17, %v1786_v39  ;;  %v1771_v44 = vadd.f32 -1.0, %v2038_v40 }
 0x162   : > { %2041 = vpow2.f32 %v593_v41  ;;  %v1011_v45 = vadd.f32 %v2640_v1, %v1010_v42  ;;  %1164 = vmatmul.f32.gmra.mxu3 %v1112_v43 }
 0x163   : > { %v528_v46 = vpop.f32.mrf.mxu0  ;;  %v628_v47 = vsel %vm548_vm7, %v523_v21, %v1771_v44 }
 0x164   : > { %v1050_v48 = vmin.f32 %v1011_v45, 0.0  ;;  %v529_v49 = vadd.f32 %v2640_v1, %v528_v46  ;;  %685 = vmatmul.f32.gmra.mxu1 %v628_v47  ;;  %vm1034_vm10 = vcmp.gt.f32.partialorder %v1011_v45, 0.0 }
 0x166   : > { %v2040_v50 = vpop.eup %2039  ;;  %v1078_v51 = vmul.f32 1.442695, %v1050_v48  ;;  %v566_v52 = vmin.f32 %v529_v49, 0.0  ;;  %vm550_vm11 = vcmp.gt.f32.partialorder %v529_v49, 0.0 }
 0x167   : > { %v1787_v53 = vadd.f32 -1.0, %v2040_v50 }
 0x168   : > { %v2042_v54 = vpop.eup %2041  ;;  %2043 = vpow2.f32 %v1078_v51  ;;  %v595_v55 = vmul.f32 1.442695, %v566_v52 }
 0x169   : > { %v1013_v56 = vpop.f32.mrf.mxu2  ;;  %v1113_v57 = vsel %vm1033_vm8, %v1008_v31, %v1787_v53  ;;  %v1772_v58 = vadd.f32 -1.0, %v2042_v54 }
 0x16a   : > { %2045 = vpow2.f32 %v595_v55  ;;  %v1014_v59 = vadd.f32 %v2640_v1, %v1013_v56  ;;  %1167 = vmatmul.f32.gmra.mxu3 %v1113_v57 }
 0x16b   : > { %v531_v60 = vpop.f32.mrf.mxu0  ;;  %v629_v61 = vsel %vm549_vm9, %v526_v35, %v1772_v58 }
 0x16c   : > { %v1051_v62 = vmin.f32 %v1014_v59, 0.0  ;;  %v532_v63 = vadd.f32 %v2640_v1, %v531_v60  ;;  %688 = vmatmul.f32.gmra.mxu1 %v629_v61  ;;  %vm1035_vm12 = vcmp.gt.f32.partialorder %v1014_v59, 0.0 }
 0x16e   : > { %v2044_v0 = vpop.eup %2043  ;;  %v1080_v2 = vmul.f32 1.442695, %v1051_v62  ;;  %v567_v3 = vmin.f32 %v532_v63, 0.0  ;;  %vm551_vm13 = vcmp.gt.f32.partialorder %v532_v63, 0.0 }
 0x16f   : > { %v1788_v4 = vadd.f32 -1.0, %v2044_v0 }
 0x170   : > { %v2046_v5 = vpop.eup %2045  ;;  %2047 = vpow2.f32 %v1080_v2  ;;  %v597_v6 = vmul.f32 1.442695, %v567_v3 }
 0x171   : > { %v1016_v7 = vpop.f32.mrf.mxu2  ;;  %v1114_v8 = vsel %vm1034_vm10, %v1011_v45, %v1788_v4  ;;  %v1773_v9 = vadd.f32 -1.0, %v2046_v5 }
 0x172   : > { %2049 = vpow2.f32 %v597_v6  ;;  %v1017_v10 = vadd.f32 %v2640_v1, %v1016_v7  ;;  %1170 = vmatmul.f32.gmra.mxu3 %v1114_v8 }
 0x173   : > { %v534_v11 = vpop.f32.mrf.mxu0  ;;  %v630_v12 = vsel %vm550_vm11, %v529_v49, %v1773_v9 }
 0x174   : > { %v1052_v13 = vmin.f32 %v1017_v10, 0.0  ;;  %v535_v14 = vadd.f32 %v2640_v1, %v534_v11  ;;  %691 = vmatmul.f32.gmra.mxu1 %v630_v12  ;;  %vm1036_vm14 = vcmp.gt.f32.partialorder %v1017_v10, 0.0 }
 0x176   : > { %v2048_v15 = vpop.eup %2047  ;;  %v1082_v16 = vmul.f32 1.442695, %v1052_v13  ;;  %v568_v17 = vmin.f32 %v535_v14, 0.0  ;;  %vm552_vm15 = vcmp.gt.f32.partialorder %v535_v14, 0.0 }
 0x177   : > { %v1789_v18 = vadd.f32 -1.0, %v2048_v15 }
 0x178   : > { %v2050_v19 = vpop.eup %2049  ;;  %2051 = vpow2.f32 %v1082_v16  ;;  %v599_v20 = vmul.f32 1.442695, %v568_v17 }
 0x179   : > { %v1019_v21 = vpop.f32.mrf.mxu2  ;;  %v1115_v22 = vsel %vm1035_vm12, %v1014_v59, %v1789_v18  ;;  %v1774_v23 = vadd.f32 -1.0, %v2050_v19 }
 0x17a   : > { %2053 = vpow2.f32 %v599_v20  ;;  %v1020_v24 = vadd.f32 %v2640_v1, %v1019_v21  ;;  %1173 = vmatmul.f32.gmra.mxu3 %v1115_v22  ;;  %v2677_v1 = vld [vmem:[%s3261_s5] ss:$0 sm:$0xff] }
 0x17b   : > { %v631_v25 = vsel %vm551_vm13, %v532_v63, %v1774_v23 }
 0x17c   : > { %v1053_v26 = vmin.f32 %v1020_v24, 0.0  ;;  %694 = vmatmul.f32.gmra.mxu1 %v631_v25  ;;  %vm1037_vm0 = vcmp.gt.f32.partialorder %v1020_v24, 0.0 }
 0x17e   : > { %v2052_v27 = vpop.eup %2051  ;;  %v1084_v28 = vmul.f32 1.442695, %v1053_v26 }
 0x17f   : > { %v1790_v29 = vadd.f32 -1.0, %v2052_v27 }
 0x180   : > { %v2054_v30 = vpop.eup %2053  ;;  %2055 = vpow2.f32 %v1084_v28 }
 0x181   : > { %v1116_v31 = vsel %vm1036_vm14, %v1017_v10, %v1790_v29  ;;  %v1775_v32 = vadd.f32 -1.0, %v2054_v30 }
 0x182   : > { %1176 = vmatmul.f32.gmra.mxu3 %v1116_v31 }
 0x183   : > { %v632_v33 = vsel %vm552_vm15, %v535_v14, %v1775_v32 }
 0x184   : > { %697 = vmatmul.f32.gmra.mxu1 %v632_v33 }
 0x186   : > { %v2056_v34 = vpop.eup %2055 }
 0x187   : > { %v1791_v35 = vadd.f32 -1.0, %v2056_v34 }
 0x189   : > { %v653_v36 = vpop.f32.mrf.mxu1  ;;  %v1117_v37 = vsel %vm1037_vm0, %v1020_v24, %v1791_v35 }
 0x18a   : > { %v2680_v38 = vadd.f32 %v2677_v1, %v653_v36  ;;  %1179 = vmatmul.f32.gmra.mxu3 %v1117_v37 }
 0x18c   : > { %v701_v39 = vmul.f32 %v2680_v38, %v2680_v38 }
 0x18e   : > { %717 = vadd.xlane.f32.xlu0 %v701_v39 }
 0x191   : > { %v656_v40 = vpop.f32.mrf.mxu1 }
 0x192   : > { %v2685_v41 = vadd.f32 %v2677_v1, %v656_v40 }
 0x194   : > { %v702_v42 = vmul.f32 %v2685_v41, %v2685_v41 }
 0x195   : > { %v1135_v43 = vpop.f32.mrf.mxu3 }
 0x196   : > { %v2690_v44 = vadd.f32 %v2677_v1, %v1135_v43  ;;  %719 = vadd.xlane.f32.xlu0 %v702_v42 }
 0x198   : > { %v1183_v45 = vmul.f32 %v2690_v44, %v2690_v44 }
 0x199   : > { %v659_v46 = vpop.f32.mrf.mxu1 }
 0x19a   : > { %v2695_v47 = vadd.f32 %v2677_v1, %v659_v46  ;;  %1199 = vadd.xlane.f32.xlu1 %v1183_v45 }
 0x19c   : > { %v703_v48 = vmul.f32 %v2695_v47, %v2695_v47 }
 0x19d   : > { %v1138_v49 = vpop.f32.mrf.mxu3 }
 0x19e   : > { %v2700_v50 = vadd.f32 %v2677_v1, %v1138_v49  ;;  %721 = vadd.xlane.f32.xlu2 %v703_v48 }
 0x1a0   : > { %v1184_v51 = vmul.f32 %v2700_v50, %v2700_v50 }
 0x1a1   : > { %v662_v52 = vpop.f32.mrf.mxu1 }
 0x1a2   : > { %v2705_v53 = vadd.f32 %v2677_v1, %v662_v52  ;;  %1201 = vadd.xlane.f32.xlu1 %v1184_v51 }
 0x1a4   : > { %v704_v54 = vmul.f32 %v2705_v53, %v2705_v53 }
 0x1a5   : > { %v1141_v55 = vpop.f32.mrf.mxu3 }
 0x1a6   : > { %v2710_v56 = vadd.f32 %v2677_v1, %v1141_v55  ;;  %723 = vadd.xlane.f32.xlu0 %v704_v54 }
 0x1a8   : > { %v1185_v57 = vmul.f32 %v2710_v56, %v2710_v56 }
 0x1a9   : > { %v665_v58 = vpop.f32.mrf.mxu1 }
 0x1aa   : > { %1203 = vadd.xlane.f32.xlu2 %v1185_v57  ;;  %v2715_v59 = vadd.f32 %v2677_v1, %v665_v58 }
 0x1ac   : > { %v705_v63 = vmul.f32 %v2715_v59, %v2715_v59 }
 0x1ad   : > { %v1144_v60 = vpop.f32.mrf.mxu3 }
 0x1ae   : > { %v2718_v61 = vadd.f32 %v2677_v1, %v1144_v60 }
 0x1b0   : > { %v1186_v62 = vmul.f32 %v2718_v61, %v2718_v61 }
 0x1b1   : > { %v668_v0 = vpop.f32.mrf.mxu1 }
 0x1b2   : > { %1205 = vadd.xlane.f32.xlu1 %v1186_v62  ;;  %725 = vadd.xlane.f32.xlu2 %v705_v63  ;;  %v2725_v2 = vadd.f32 %v2677_v1, %v668_v0 }
 0x1b4   : > { %v706_v5 = vmul.f32 %v2725_v2, %v2725_v2 }
 0x1b5   : > { %v1147_v3 = vpop.f32.mrf.mxu3 }
 0x1b6   : > { %v2728_v4 = vadd.f32 %v2677_v1, %v1147_v3 }
 0x1b8   : > { %v1187_v6 = vmul.f32 %v2728_v4, %v2728_v4 }
 0x1b9   : > { %v671_v7 = vpop.f32.mrf.mxu1 }
 0x1ba   : > { %727 = vadd.xlane.f32.xlu1 %v706_v5  ;;  %1207 = vadd.xlane.f32.xlu0 %v1187_v6  ;;  %v2735_v8 = vadd.f32 %v2677_v1, %v671_v7 }
 0x1bc   : > { %v707_v12 = vmul.f32 %v2735_v8, %v2735_v8 }
 0x1bd   : > { %v1150_v9 = vpop.f32.mrf.mxu3 }
 0x1be   : > { %v2738_v10 = vadd.f32 %v2677_v1, %v1150_v9 }
 0x1c0   : > { %v1188_v11 = vmul.f32 %v2738_v10, %v2738_v10 }
 0x1c1   : > { %v674_v13 = vpop.f32.mrf.mxu1 }
 0x1c2   : > { %1209 = vadd.xlane.f32.xlu2 %v1188_v11  ;;  %729 = vadd.xlane.f32.xlu0 %v707_v12  ;;  %v2745_v14 = vadd.f32 %v2677_v1, %v674_v13 }
 0x1c4   : > { %v708_v18 = vmul.f32 %v2745_v14, %v2745_v14 }
 0x1c5   : > { %v1153_v15 = vpop.f32.mrf.mxu3 }
 0x1c6   : > { %v2748_v16 = vadd.f32 %v2677_v1, %v1153_v15 }
 0x1c8   : > { %v1189_v17 = vmul.f32 %v2748_v16, %v2748_v16 }
 0x1c9   : > { %v677_v19 = vpop.f32.mrf.mxu1 }
 0x1ca   : > { %1211 = vadd.xlane.f32.xlu1 %v1189_v17  ;;  %731 = vadd.xlane.f32.xlu2 %v708_v18  ;;  %v2755_v20 = vadd.f32 %v2677_v1, %v677_v19 }
 0x1cc   : > { %v709_v23 = vmul.f32 %v2755_v20, %v2755_v20 }
 0x1cd   : > { %v1156_v21 = vpop.f32.mrf.mxu3 }
 0x1ce   : > { %v2758_v22 = vadd.f32 %v2677_v1, %v1156_v21 }
 0x1d0   : > { %v1190_v24 = vmul.f32 %v2758_v22, %v2758_v22 }
 0x1d1   : > { %v680_v25 = vpop.f32.mrf.mxu1 }
 0x1d2   : > { %733 = vadd.xlane.f32.xlu1 %v709_v23  ;;  %1213 = vadd.xlane.f32.xlu0 %v1190_v24  ;;  %v2765_v26 = vadd.f32 %v2677_v1, %v680_v25 }
 0x1d4   : > { %v710_v30 = vmul.f32 %v2765_v26, %v2765_v26 }
 0x1d5   : > { %v1159_v27 = vpop.f32.mrf.mxu3 }
 0x1d6   : > { %v2768_v28 = vadd.f32 %v2677_v1, %v1159_v27 }
 0x1d8   : > { %v1191_v29 = vmul.f32 %v2768_v28, %v2768_v28 }
 0x1d9   : > { %v683_v31 = vpop.f32.mrf.mxu1 }
 0x1da   : > { %1215 = vadd.xlane.f32.xlu2 %v1191_v29  ;;  %735 = vadd.xlane.f32.xlu0 %v710_v30  ;;  %v2775_v32 = vadd.f32 %v2677_v1, %v683_v31 }
 0x1dc   : > { %v711_v36 = vmul.f32 %v2775_v32, %v2775_v32 }
 0x1dd   : > { %v1162_v33 = vpop.f32.mrf.mxu3 }
 0x1de   : > { %v2778_v34 = vadd.f32 %v2677_v1, %v1162_v33 }
 0x1e0   : > { %v1192_v35 = vmul.f32 %v2778_v34, %v2778_v34 }
 0x1e1   : > { %v686_v37 = vpop.f32.mrf.mxu1 }
 0x1e2   : > { %1217 = vadd.xlane.f32.xlu1 %v1192_v35  ;;  %737 = vadd.xlane.f32.xlu2 %v711_v36  ;;  %v2785_v39 = vadd.f32 %v2677_v1, %v686_v37 }
 0x1e4   : > { %v712_v43 = vmul.f32 %v2785_v39, %v2785_v39 }
 0x1e5   : > { %v1165_v40 = vpop.f32.mrf.mxu3 }
 0x1e6   : > { %v2788_v42 = vadd.f32 %v2677_v1, %v1165_v40 }
 0x1e8   : > { %v1193_v45 = vmul.f32 %v2788_v42, %v2788_v42 }
 0x1e9   : > { %v689_v46 = vpop.f32.mrf.mxu1 }
 0x1ea   : > { %739 = vadd.xlane.f32.xlu1 %v712_v43  ;;  %1219 = vadd.xlane.f32.xlu0 %v1193_v45  ;;  %v2795_v48 = vadd.f32 %v2677_v1, %v689_v46 }
 0x1ec   : > { %v713_v54 = vmul.f32 %v2795_v48, %v2795_v48 }
 0x1ed   : > { %v1168_v49 = vpop.f32.mrf.mxu3 }
 0x1ee   : > { %v2798_v51 = vadd.f32 %v2677_v1, %v1168_v49 }
 0x1f0   : > { %v1194_v52 = vmul.f32 %v2798_v51, %v2798_v51 }
 0x1f1   : > { %v692_v55 = vpop.f32.mrf.mxu1 }
 0x1f2   : > { %1221 = vadd.xlane.f32.xlu2 %v1194_v52  ;;  %741 = vadd.xlane.f32.xlu0 %v713_v54  ;;  %v2805_v57 = vadd.f32 %v2677_v1, %v692_v55 }
 0x1f4   : > { %v714_v63 = vmul.f32 %v2805_v57, %v2805_v57 }
 0x1f5   : > { %v1171_v58 = vpop.f32.mrf.mxu3 }
 0x1f6   : > { %v2808_v60 = vadd.f32 %v2677_v1, %v1171_v58 }
 0x1f8   : > { %v1195_v62 = vmul.f32 %v2808_v60, %v2808_v60 }
 0x1f9   : > { %v695_v0 = vpop.f32.mrf.mxu1 }
 0x1fa   : > { %1223 = vadd.xlane.f32.xlu1 %v1195_v62  ;;  %743 = vadd.xlane.f32.xlu2 %v714_v63  ;;  %v2815_v3 = vadd.f32 %v2677_v1, %v695_v0 }
 0x1fc   : > { %v715_v7 = vmul.f32 %v2815_v3, %v2815_v3 }
 0x1fd   : > { %v1174_v5 = vpop.f32.mrf.mxu3 }
 0x1fe   : > { %v2818_v6 = vadd.f32 %v2677_v1, %v1174_v5 }
 0x200   : > { %v1196_v9 = vmul.f32 %v2818_v6, %v2818_v6 }
 0x201   : > { %v698_v11 = vpop.f32.mrf.mxu1  ;;  %v718_v12 = vpop.xlane.xlu0 %717 }
 0x202   : > { %v749_v13 = vmax.f32 %v718_v12, 1e-24  ;;  %745 = vadd.xlane.f32.xlu1 %v715_v7  ;;  %1225 = vadd.xlane.f32.xlu0 %v1196_v9  ;;  %v2825_v15 = vadd.f32 %v2677_v1, %v698_v11 }
 0x204   : > { %2057 = vrsqrt.f32 %v749_v13  ;;  %v716_v21 = vmul.f32 %v2825_v15, %v2825_v15  ;;  %vm771_vm2 = vweird.f32 %v749_v13 }
 0x205   : > { %v1177_v17 = vpop.f32.mrf.mxu3 }
 0x206   : > { %v2828_v18 = vadd.f32 %v2677_v1, %v1177_v17 }
 0x208   : > { %v1197_v19 = vmul.f32 %v2828_v18, %v2828_v18 }
 0x209   : > { %v720_v23 = vpop.xlane.xlu0 %719 }
 0x20a   : > { %v2058_v24 = vpop.eup %2057  ;;  %v750_v25 = vmax.f32 %v720_v23, 1e-24  ;;  %1227 = vadd.xlane.f32.xlu2 %v1197_v19  ;;  %747 = vadd.xlane.f32.xlu0 %v716_v21 }
 0x20b   : > { %v766_v27 = vmul.f32 %v2058_v24, %v749_v13  ;;  %vm772_vm1 = vweird.f32 %v2058_v24 }
 0x20c   : > { %2059 = vrsqrt.f32 %v750_v25  ;;  %vm773_vm4 = vmor %vm771_vm2, %vm772_vm1  ;;  %vm781_vm5 = vweird.f32 %v750_v25 }
 0x20d   : > { %v767_v29 = vmul.f32 %v2058_v24, %v766_v27  ;;  %v1180_v30 = vpop.f32.mrf.mxu3  ;;  %v1200_v31 = vpop.xlane.xlu1 %1199 }
 0x20e   : > { %v2835_v33 = vadd.f32 %v2677_v1, %v1180_v30  ;;  %v1231_v35 = vmax.f32 %v1200_v31, 1e-24 }
 0x20f   : > { %v768_v36 = vmul.f32 0.5, %v767_v29 }
 0x210   : > { %2061 = vrsqrt.f32 %v1231_v35  ;;  %v1198_v37 = vmul.f32 %v2835_v33, %v2835_v33  ;;  %vm1253_vm8 = vweird.f32 %v1231_v35 }
 0x211   : > { %v722_v40 = vpop.xlane.xlu2 %721  ;;  %v769_v46 = vsub.f32 1.5, %v768_v36 }
 0x212   : > { %v2060_v43 = vpop.eup %2059  ;;  %v2839_v45 = vmax.f32 %v722_v40, 1e-24  ;;  %1229 = vadd.xlane.f32.xlu1 %v1198_v37 }
 0x213   : > { %v776_v49 = vmul.f32 %v2060_v43, %v750_v25  ;;  %v770_v58 = vmul.f32 %v2058_v24, %v769_v46  ;;  %vm782_vm3 = vweird.f32 %v2060_v43 }
 0x214   : > { %2063 = vrsqrt.f32 %v2839_v45  ;;  %vm783_vm6 = vmor %vm781_vm5, %vm782_vm3  ;;  %vm791_vm13 = vweird.f32 %v2839_v45 }
 0x215   : > { %v777_v52 = vmul.f32 %v2060_v43, %v776_v49  ;;  %v1202_v54 = vpop.xlane.xlu1 %1201  ;;  %v774_v12 = vsel %vm773_vm4, %v2058_v24, %v770_v58 }
 0x216   : > { %v2062_v55 = vpop.eup %2061  ;;  %v1232_v1 = vmax.f32 %v1202_v54, 1e-24  ;;  %v925_v31 = vmul.f32 %v774_v12, %v2680_v38 }
 0x217   : > { %v778_v62 = vmul.f32 0.5, %v777_v52  ;;  %v1248_v63 = vmul.f32 %v2062_v55, %v1231_v35  ;;  %vm1254_vm7 = vweird.f32 %v2062_v55 }
 0x218   : > { %2065 = vrsqrt.f32 %v1232_v1  ;;  %vm1255_vm9 = vmor %vm1253_vm8, %vm1254_vm7  ;;  %vm1263_vm12 = vweird.f32 %v1232_v1 }
 0x219   : > { %v779_v0 = vsub.f32 1.5, %v778_v62  ;;  %v1249_v5 = vmul.f32 %v2062_v55, %v1248_v63  ;;  %v724_v7 = vpop.xlane.xlu0 %723 }
 0x21a   : > { %v2842_v9 = vpop.eup %2063  ;;  %v752_v11 = vmax.f32 %v724_v7, 1e-24 }
 0x21b   : > { %v780_v17 = vmul.f32 %v2060_v43, %v779_v0  ;;  %v1250_v19 = vmul.f32 0.5, %v1249_v5  ;;  %v786_v21 = vmul.f32 %v2842_v9, %v2839_v45  ;;  %vm792_vm11 = vweird.f32 %v2842_v9 }
 0x21c   : > { %2067 = vrsqrt.f32 %v752_v11  ;;  %vm793_vm0 = vmor %vm791_vm13, %vm792_vm11  ;;  %vm801_vm1 = vweird.f32 %v752_v11 }
 0x21d   : > { %v784_v23 = vsel %vm783_vm6, %v2060_v43, %v780_v17  ;;  %v1251_v27 = vsub.f32 1.5, %v1250_v19  ;;  %v787_v13 = vmul.f32 %v2842_v9, %v786_v21  ;;  %v1204_v29 = vpop.xlane.xlu2 %1203 }
 0x21e   : > { %v2066_v30 = vpop.eup %2065  ;;  %v926_v25 = vmul.f32 %v784_v23, %v2685_v41  ;;  %v2849_v24 = vmax.f32 %v1204_v29, 1e-24 }
 0x21f   : > { %v1252_v36 = vmul.f32 %v2062_v55, %v1251_v27  ;;  %v788_v37 = vmul.f32 0.5, %v787_v13  ;;  %v1258_v40 = vmul.f32 %v2066_v30, %v1232_v1  ;;  %vm1264_vm10 = vweird.f32 %v2066_v30 }
 0x220   : > { %v1809_v46 = vpack.c.bf16 %v926_v25, %v925_v31  ;;  %2069 = vrsqrt.f32 %v2849_v24  ;;  %vm1265_vm14 = vmor %vm1263_vm12, %vm1264_vm10  ;;  %vm1273_vm4 = vweird.f32 %v2849_v24 }
 0x221   : > { %v1256_v43 = vsel %vm1255_vm9, %v2062_v55, %v1252_v36  ;;  %v1259_v49 = vmul.f32 %v2066_v30, %v1258_v40  ;;  %v789_v58 = vsub.f32 1.5, %v788_v37 }
 0x222   : > { %v2068_v52 = vpop.eup %2067  ;;  %1810 = vst [vmem:[%s2599_s4] sm:$0xff] %v1809_v46   ;;  %v1407_v54 = vmul.f32 %v1256_v43, %v2690_v44 }
 0x223   : > { %v1260_v38 = vmul.f32 0.5, %v1259_v49  ;;  %v796_v62 = vmul.f32 %v2068_v52, %v752_v11  ;;  %v790_v12 = vmul.f32 %v2842_v9, %v789_v58  ;;  %vm802_vm15 = vweird.f32 %v2068_v52 }
 0x224   : > { %v1488_v41 = vmul.f32 %v1407_v54, %v925_v31  ;;  %vm803_vm2 = vmor %vm801_vm1, %vm802_vm15 }
 0x225   : > { %v1261_v63 = vsub.f32 1.5, %v1260_v38  ;;  %v797_v0 = vmul.f32 %v2068_v52, %v796_v62  ;;  %v1206_v35 = vpop.xlane.xlu1 %1205  ;;  %v726_v5 = vpop.xlane.xlu2 %725  ;;  %v794_v29 = vsel %vm793_vm0, %v2842_v9, %v790_v12 }
 0x226   : > { %v2070_v7 = vpop.eup %2069  ;;  %v2856_v55 = vmax.f32 %v1206_v35, 1e-24  ;;  %v2858_v17 = vmax.f32 %v726_v5, 1e-24  ;;  %v927_v40 = vmul.f32 %v794_v29, %v2695_v47 }
 0x227   : > { %v1262_v19 = vmul.f32 %v2066_v30, %v1261_v63  ;;  %v798_v44 = vmul.f32 0.5, %v797_v0  ;;  %v1268_v21 = vmul.f32 %v2070_v7, %v2849_v24  ;;  %vm1274_vm3 = vweird.f32 %v2070_v7 }
 0x228   : > { %2071 = vrsqrt.f32 %v2856_v55  ;;  %vm1275_vm5 = vmor %vm1273_vm4, %vm1274_vm3  ;;  %vm1283_vm7 = vweird.f32 %v2856_v55  ;;  %vm811_vm10 = vweird.f32 %v2858_v17 }
 0x229   : > { %v1266_v23 = vsel %vm1265_vm14, %v2066_v30, %v1262_v19  ;;  %v799_v27 = vsub.f32 1.5, %v798_v44  ;;  %v1269_v13 = vmul.f32 %v2070_v7, %v1268_v21  ;;  %2073 = vrsqrt.f32 %v2858_v17 }
 0x22a   : > { %v1408_v1 = vmul.f32 %v1266_v23, %v2700_v50 }
 0x22b   : > { %v800_v31 = vmul.f32 %v2068_v52, %v799_v27  ;;  %v1270_v36 = vmul.f32 0.5, %v1269_v13 }
 0x22c   : > { %v1849_v37 = vpack.c.bf16 %v1408_v1, %v1407_v54  ;;  %v1489_v45 = vmul.f32 %v1408_v1, %v926_v25 }
 0x22d   : > { %v804_v46 = vsel %vm803_vm2, %v2068_v52, %v800_v31  ;;  %v1271_v43 = vsub.f32 1.5, %v1270_v36  ;;  %v728_v30 = vpop.xlane.xlu1 %727  ;;  %v1208_v49 = vpop.xlane.xlu0 %1207 }
 0x22e   : > { %v2072_v58 = vpop.eup %2071  ;;  %1850 = vst [vmem:[%s2601_s18] sm:$0xff] %v1849_v37   ;;  %v1504_v38 = vadd.f32 %v1489_v45, %v1488_v41  ;;  %v928_v9 = vmul.f32 %v804_v46, %v2705_v53  ;;  %v2869_v50 = vmax.f32 %v728_v30, 1e-24  ;;  %v2871_v11 = vmax.f32 %v1208_v49, 1e-24 }
 0x22f   : > { %v2873_v54 = vpop.eup %2073  ;;  %v1272_v25 = vmul.f32 %v2070_v7, %v1271_v43  ;;  %v1278_v47 = vmul.f32 %v2072_v58, %v2856_v55  ;;  %vm1284_vm6 = vweird.f32 %v2072_v58 }
 0x230   : > { %v1814_v52 = vpack.c.bf16 %v928_v9, %v927_v40  ;;  %v806_v62 = vmul.f32 %v2873_v54, %v2858_v17  ;;  %2075 = vrsqrt.f32 %v2869_v50  ;;  %vm1285_vm8 = vmor %vm1283_vm7, %vm1284_vm6  ;;  %vm812_vm9 = vweird.f32 %v2873_v54 }
 0x231   : > { %v1276_v41 = vsel %vm1275_vm5, %v2070_v7, %v1272_v25  ;;  %v1279_v53 = vmul.f32 %v2072_v58, %v1278_v47  ;;  %2077 = vrsqrt.f32 %v2871_v11  ;;  %vm2898_vm13 = vmor %vm811_vm10, %vm812_vm9  ;;  %vm821_vm14 = vweird.f32 %v2869_v50 }
 0x232   : > { %1886 = vst [vmem:[%s2599_s4 + $0x8] sm:$0xff] %v1814_v52   ;;  %v1409_v63 = vmul.f32 %v1276_v41, %v2710_v56  ;;  %v807_v0 = vmul.f32 %v2873_v54, %v806_v62  ;;  %vm1293_vm0 = vweird.f32 %v2871_v11 }
 0x233   : > { %v1280_v35 = vmul.f32 0.5, %v1279_v53 }
 0x234   : > { %v1490_v24 = vmul.f32 %v1409_v63, %v927_v40  ;;  %v808_v5 = vmul.f32 0.5, %v807_v0 }
 0x235   : > { %v1281_v12 = vsub.f32 1.5, %v1280_v35  ;;  %v1210_v19 = vpop.xlane.xlu2 %1209  ;;  %v730_v44 = vpop.xlane.xlu0 %729 }
 0x236   : > { %v2076_v21 = vpop.eup %2075  ;;  %v1505_v23 = vadd.f32 %v1504_v38, %v1490_v24  ;;  %v2884_v27 = vmax.f32 %v1210_v19, 1e-24  ;;  %v2886_v7 = vmax.f32 %v730_v44, 1e-24  ;;  %v809_v56 = vsub.f32 1.5, %v808_v5 }
 0x237   : > { %v2078_v13 = vpop.eup %2077  ;;  %v1282_v29 = vmul.f32 %v2072_v58, %v1281_v12  ;;  %v816_v1 = vmul.f32 %v2076_v21, %v2869_v50  ;;  %vm822_vm11 = vweird.f32 %v2076_v21 }
 0x238   : > { %v1288_v31 = vmul.f32 %v2078_v13, %v2871_v11  ;;  %2079 = vrsqrt.f32 %v2884_v27  ;;  %v810_v46 = vmul.f32 %v2873_v54, %v809_v56  ;;  %vm1294_vm12 = vweird.f32 %v2078_v13  ;;  %vm823_vm15 = vmor %vm821_vm14, %vm822_vm11 }
 0x239   : > { %v1286_v36 = vsel %vm1285_vm8, %v2072_v58, %v1282_v29  ;;  %v817_v37 = vmul.f32 %v2076_v21, %v816_v1  ;;  %2081 = vrsqrt.f32 %v2886_v7  ;;  %vm1295_vm1 = vmor %vm1293_vm0, %vm1294_vm12  ;;  %vm1303_vm3 = vweird.f32 %v2884_v27 }
 0x23a   : > { %v1410_v45 = vmul.f32 %v1286_v36, %v2718_v61  ;;  %v1289_v40 = vmul.f32 %v2078_v13, %v1288_v31  ;;  %v814_v17 = vsel %vm2898_vm13, %v2873_v54, %v810_v46  ;;  %vm831_vm6 = vweird.f32 %v2886_v7 }
 0x23b   : > { %v818_v55 = vmul.f32 0.5, %v817_v37  ;;  %v929_v50 = vmul.f32 %v814_v17, %v2715_v59 }
 0x23c   : > { %v1854_v43 = vpack.c.bf16 %v1410_v45, %v1409_v63  ;;  %v1491_v30 = vmul.f32 %v1410_v45, %v928_v9  ;;  %v1290_v49 = vmul.f32 0.5, %v1289_v40 }
 0x23d   : > { %v819_v38 = vsub.f32 1.5, %v818_v55  ;;  %v1212_v58 = vpop.xlane.xlu1 %1211  ;;  %v732_v25 = vpop.xlane.xlu2 %731 }
 0x23e   : > { %v2080_v47 = vpop.eup %2079  ;;  %1893 = vst [vmem:[%s2601_s18 + $0x8] sm:$0xff] %v1854_v43   ;;  %v1506_v52 = vadd.f32 %v1505_v23, %v1491_v30  ;;  %v1291_v62 = vsub.f32 1.5, %v1290_v49  ;;  %v2902_v41 = vmax.f32 %v1212_v58, 1e-24  ;;  %v2904_v53 = vmax.f32 %v732_v25, 1e-24 }
 0x23f   : > { %v2906_v9 = vpop.eup %2081  ;;  %v820_v63 = vmul.f32 %v2076_v21, %v819_v38  ;;  %v1298_v0 = vmul.f32 %v2080_v47, %v2884_v27  ;;  %vm1304_vm2 = vweird.f32 %v2080_v47 }
 0x240   : > { %v1292_v35 = vmul.f32 %v2078_v13, %v1291_v62  ;;  %v826_v24 = vmul.f32 %v2906_v9, %v2886_v7  ;;  %2083 = vrsqrt.f32 %v2902_v41  ;;  %vm1305_vm4 = vmor %vm1303_vm3, %vm1304_vm2  ;;  %vm832_vm5 = vweird.f32 %v2906_v9 }
 0x241   : > { %v824_v5 = vsel %vm823_vm15, %v2076_v21, %v820_v63  ;;  %v1299_v12 = vmul.f32 %v2080_v47, %v1298_v0  ;;  %2085 = vrsqrt.f32 %v2904_v53  ;;  %vm833_vm8 = vmor %vm831_vm6, %vm832_vm5  ;;  %vm841_vm9 = vweird.f32 %v2904_v53 }
 0x242   : > { %v930_v54 = vmul.f32 %v824_v5, %v2725_v2  ;;  %v1296_v19 = vsel %vm1295_vm1, %v2078_v13, %v1292_v35  ;;  %v827_v44 = vmul.f32 %v2906_v9, %v826_v24  ;;  %vm1313_vm12 = vweird.f32 %v2902_v41 }
 0x243   : > { %v1411_v11 = vmul.f32 %v1296_v19, %v2728_v4  ;;  %v1300_v23 = vmul.f32 0.5, %v1299_v12 }
 0x244   : > { %v1819_v29 = vpack.c.bf16 %v930_v54, %v929_v50  ;;  %v828_v56 = vmul.f32 0.5, %v827_v44 }
 0x245   : > { %v1492_v1 = vmul.f32 %v1411_v11, %v929_v50  ;;  %v1301_v21 = vsub.f32 1.5, %v1300_v23  ;;  %v734_v31 = vpop.xlane.xlu1 %733  ;;  %v1214_v36 = vpop.xlane.xlu0 %1213 }
 0x246   : > { %v2924_v37 = vpop.eup %2083  ;;  %1887 = vst [vmem:[%s2599_s4 + $0x10] sm:$0xff] %v1819_v29   ;;  %v2927_v45 = vmax.f32 %v734_v31, 1e-24  ;;  %v2929_v59 = vmax.f32 %v1214_v36, 1e-24  ;;  %v829_v46 = vsub.f32 1.5, %v828_v56 }
 0x247   : > { %v2086_v2 = vpop.eup %2085  ;;  %v1507_v13 = vadd.f32 %v1506_v52, %v1492_v1  ;;  %v1302_v40 = vmul.f32 %v2080_v47, %v1301_v21  ;;  %v1308_v4 = vmul.f32 %v2924_v37, %v2902_v41  ;;  %vm1314_vm11 = vweird.f32 %v2924_v37 }
 0x248   : > { %v836_v55 = vmul.f32 %v2086_v2, %v2904_v53  ;;  %2087 = vrsqrt.f32 %v2927_v45  ;;  %v830_v52 = vmul.f32 %v2906_v9, %v829_v46  ;;  %vm842_vm7 = vweird.f32 %v2086_v2  ;;  %vm2975_vm13 = vmor %vm1313_vm12, %vm1314_vm11 }
 0x249   : > { %v1306_v43 = vsel %vm1305_vm4, %v2080_v47, %v1302_v40  ;;  %v1309_v30 = vmul.f32 %v2924_v37, %v1308_v4  ;;  %2089 = vrsqrt.f32 %v2929_v59  ;;  %vm843_vm10 = vmor %vm841_vm9, %vm842_vm7  ;;  %vm1323_vm15 = vweird.f32 %v2929_v59 }
 0x24a   : > { %v1412_v49 = vmul.f32 %v1306_v43, %v2738_v10  ;;  %v837_v38 = vmul.f32 %v2086_v2, %v836_v55  ;;  %v834_v12 = vsel %vm833_vm8, %v2906_v9, %v830_v52  ;;  %vm851_vm2 = vweird.f32 %v2927_v45 }
 0x24b   : > { %v1310_v27 = vmul.f32 0.5, %v1309_v30  ;;  %v2963_v53 = vmul.f32 %v834_v12, %v2735_v8 }
 0x24c   : > { %v1859_v58 = vpack.c.bf16 %v1412_v49, %v1411_v11  ;;  %v1493_v25 = vmul.f32 %v1412_v49, %v930_v54  ;;  %v838_v61 = vmul.f32 0.5, %v837_v38 }
 0x24d   : > { %v1216_v47 = vpop.xlane.xlu2 %1215  ;;  %v736_v62 = vpop.xlane.xlu0 %735  ;;  %v1311_v5 = vsub.f32 1.5, %v1310_v27 }
 0x24e   : > { %v2942_v17 = vpop.eup %2087  ;;  %1894 = vst [vmem:[%s2601_s18 + $0x10] sm:$0xff] %v1859_v58   ;;  %v2945_v63 = vadd.f32 %v1507_v13, %v1493_v25  ;;  %v839_v10 = vsub.f32 1.5, %v838_v61  ;;  %v2947_v0 = vmax.f32 %v1216_v47, 1e-24  ;;  %v2949_v35 = vmax.f32 %v736_v62, 1e-24 }
 0x24f   : > { %v2090_v24 = vpop.eup %2089  ;;  %v846_v7 = vmul.f32 %v2942_v17, %v2927_v45  ;;  %v1312_v23 = vmul.f32 %v2924_v37, %v1311_v5  ;;  %vm852_vm1 = vweird.f32 %v2942_v17 }
 0x250   : > { %v840_v50 = vmul.f32 %v2086_v2, %v839_v10  ;;  %v1318_v54 = vmul.f32 %v2090_v24, %v2929_v59  ;;  %2091 = vrsqrt.f32 %v2947_v0  ;;  %vm1324_vm14 = vweird.f32 %v2090_v24  ;;  %vm853_vm4 = vmor %vm851_vm2, %vm852_vm1 }
 0x251   : > { %v847_v19 = vmul.f32 %v2942_v17, %v846_v7  ;;  %2093 = vrsqrt.f32 %v2949_v35  ;;  %v1316_v41 = vsel %vm2975_vm13, %v2924_v37, %v1312_v23  ;;  %vm1325_vm0 = vmor %vm1323_vm15, %vm1324_vm14  ;;  %vm861_vm5 = vweird.f32 %v2949_v35 }
 0x252   : > { %v844_v44 = vsel %vm843_vm10, %v2086_v2, %v840_v50  ;;  %v1319_v11 = vmul.f32 %v2090_v24, %v1318_v54  ;;  %v2995_v37 = vmul.f32 %v1316_v41, %v2748_v16  ;;  %vm1333_vm8 = vweird.f32 %v2947_v0 }
 0x253   : > { %v2968_v9 = vmul.f32 %v844_v44, %v2745_v14  ;;  %v848_v29 = vmul.f32 0.5, %v847_v19 }
 0x254   : > { %v1320_v56 = vmul.f32 0.5, %v1319_v11 }
 0x255   : > { %v1824_v1 = vpack.c.bf16 %v2968_v9, %v2963_v53  ;;  %v1218_v21 = vpop.xlane.xlu1 %1217  ;;  %v738_v31 = vpop.xlane.xlu2 %737  ;;  %v849_v46 = vsub.f32 1.5, %v848_v29 }
 0x256   : > { %v2973_v36 = vpop.eup %2091  ;;  %v1321_v2 = vsub.f32 1.5, %v1320_v56  ;;  %v2979_v13 = vmax.f32 %v1218_v21, 1e-24  ;;  %v2981_v14 = vmax.f32 %v738_v31, 1e-24 }
 0x257   : > { %v2094_v40 = vpop.eup %2093  ;;  %1888 = vst [vmem:[%s2599_s4 + $0x18] sm:$0xff] %v1824_v1   ;;  %v1328_v4 = vmul.f32 %v2973_v36, %v2947_v0  ;;  %v850_v58 = vmul.f32 %v2942_v17, %v849_v46  ;;  %vm1334_vm7 = vweird.f32 %v2973_v36 }
 0x258   : > { %v1322_v55 = vmul.f32 %v2090_v24, %v1321_v2  ;;  %v856_v43 = vmul.f32 %v2094_v40, %v2949_v35  ;;  %2095 = vrsqrt.f32 %v2979_v13  ;;  %vm862_vm3 = vweird.f32 %v2094_v40  ;;  %vm3033_vm10 = vmor %vm1333_vm8, %vm1334_vm7 }
 0x259   : > { %v1329_v30 = vmul.f32 %v2973_v36, %v1328_v4  ;;  %2097 = vrsqrt.f32 %v2981_v14  ;;  %v854_v7 = vsel %vm853_vm4, %v2942_v17, %v850_v58  ;;  %vm863_vm6 = vmor %vm861_vm5, %vm862_vm3  ;;  %vm1343_vm11 = vweird.f32 %v2979_v13 }
 0x25a   : > { %v1326_v49 = vsel %vm1325_vm0, %v2090_v24, %v1322_v55  ;;  %v857_v38 = vmul.f32 %v2094_v40, %v856_v43  ;;  %v3022_v35 = vmul.f32 %v854_v7, %v2755_v20  ;;  %vm871_vm14 = vweird.f32 %v2981_v14 }
 0x25b   : > { %v2998_v59 = vmul.f32 %v1326_v49, %v2758_v22  ;;  %v1330_v27 = vmul.f32 0.5, %v1329_v30 }
 0x25c   : > { %v858_v25 = vmul.f32 0.5, %v857_v38 }
 0x25d   : > { %v1864_v52 = vpack.c.bf16 %v2998_v59, %v2995_v37  ;;  %v740_v61 = vpop.xlane.xlu1 %739  ;;  %v1220_v47 = vpop.xlane.xlu0 %1219  ;;  %v1331_v5 = vsub.f32 1.5, %v1330_v27 }
 0x25e   : > { %v2096_v62 = vpop.eup %2095  ;;  %v859_v16 = vsub.f32 1.5, %v858_v25  ;;  %v3005_v10 = vmax.f32 %v740_v61, 1e-24  ;;  %v3007_v22 = vmax.f32 %v1220_v47, 1e-24 }
 0x25f   : > { %v3009_v24 = vpop.eup %2097  ;;  %1895 = vst [vmem:[%s2601_s18 + $0x18] sm:$0xff] %v1864_v52   ;;  %v1338_v45 = vmul.f32 %v2096_v62, %v2979_v13  ;;  %v1332_v17 = vmul.f32 %v2973_v36, %v1331_v5  ;;  %vm1344_vm9 = vweird.f32 %v2096_v62 }
 0x260   : > { %v860_v12 = vmul.f32 %v2094_v40, %v859_v16  ;;  %v866_v50 = vmul.f32 %v3009_v24, %v2981_v14  ;;  %2099 = vrsqrt.f32 %v3005_v10  ;;  %vm1345_vm12 = vmor %vm1343_vm11, %vm1344_vm9  ;;  %vm872_vm13 = vweird.f32 %v3009_v24 }
 0x261   : > { %v1339_v54 = vmul.f32 %v2096_v62, %v1338_v45  ;;  %2101 = vrsqrt.f32 %v3007_v22  ;;  %vm873_vm0 = vmor %vm871_vm14, %vm872_vm13  ;;  %vm881_vm1 = vweird.f32 %v3005_v10  ;;  %vm1353_vm4 = vweird.f32 %v3007_v22 }
 0x262   : > { %v864_v19 = vsel %vm863_vm6, %v2094_v40, %v860_v12  ;;  %v867_v44 = vmul.f32 %v3009_v24, %v866_v50  ;;  %v1336_v40 = vsel %vm3033_vm10, %v2973_v36, %v1332_v17 }
 0x263   : > { %v3026_v11 = vmul.f32 %v864_v19, %v2765_v26  ;;  %v1340_v23 = vmul.f32 0.5, %v1339_v54  ;;  %v3054_v30 = vmul.f32 %v1336_v40, %v2768_v28 }
 0x264   : > { %v868_v29 = vmul.f32 0.5, %v867_v44 }
 0x265   : > { %v1829_v56 = vpack.c.bf16 %v3026_v11, %v3022_v35  ;;  %v1341_v1 = vsub.f32 1.5, %v1340_v23  ;;  %v1222_v21 = vpop.xlane.xlu2 %1221  ;;  %v742_v31 = vpop.xlane.xlu0 %741 }
 0x266   : > { %v2100_v8 = vpop.eup %2099  ;;  %v3038_v26 = vmax.f32 %v1222_v21, 1e-24  ;;  %v3040_v2 = vmax.f32 %v742_v31, 1e-24  ;;  %v869_v4 = vsub.f32 1.5, %v868_v29 }
 0x267   : > { %v3042_v0 = vpop.eup %2101  ;;  %1889 = vst [vmem:[%s2599_s4 + $0x20] sm:$0xff] %v1829_v56   ;;  %v1342_v41 = vmul.f32 %v2096_v62, %v1341_v1  ;;  %v876_v46 = vmul.f32 %v2100_v8, %v3005_v10  ;;  %vm882_vm15 = vweird.f32 %v2100_v8 }
 0x268   : > { %v1348_v55 = vmul.f32 %v3042_v0, %v3007_v22  ;;  %2103 = vrsqrt.f32 %v3038_v26  ;;  %v870_v38 = vmul.f32 %v3009_v24, %v869_v4  ;;  %vm883_vm2 = vmor %vm881_vm1, %vm882_vm15  ;;  %vm1354_vm3 = vweird.f32 %v3042_v0 }
 0x269   : > { %v1346_v13 = vsel %vm1345_vm12, %v2096_v62, %v1342_v41  ;;  %v877_v43 = vmul.f32 %v2100_v8, %v876_v46  ;;  %2105 = vrsqrt.f32 %v3040_v2  ;;  %vm1355_vm6 = vmor %vm1353_vm4, %vm1354_vm3  ;;  %vm1363_vm7 = vweird.f32 %v3038_v26 }
 0x26a   : > { %v3057_v36 = vmul.f32 %v1346_v13, %v2778_v34  ;;  %v1349_v49 = vmul.f32 %v3042_v0, %v1348_v55  ;;  %v874_v5 = vsel %vm873_vm0, %v3009_v24, %v870_v38  ;;  %vm891_vm10 = vweird.f32 %v3040_v2 }
 0x26b   : > { %v878_v27 = vmul.f32 0.5, %v877_v43  ;;  %v3080_v54 = vmul.f32 %v874_v5, %v2775_v32 }
 0x26c   : > { %v1869_v58 = vpack.c.bf16 %v3057_v36, %v3054_v30  ;;  %v1350_v25 = vmul.f32 0.5, %v1349_v49 }
 0x26d   : > { %v879_v52 = vsub.f32 1.5, %v878_v27  ;;  %v1224_v28 = vpop.xlane.xlu1 %1223  ;;  %v744_v61 = vpop.xlane.xlu2 %743 }
 0x26e   : > { %v2104_v47 = vpop.eup %2103  ;;  %1896 = vst [vmem:[%s2601_s18 + $0x20] sm:$0xff] %v1869_v58   ;;  %v3067_v34 = vmax.f32 %v1224_v28, 1e-24  ;;  %v3069_v62 = vmax.f32 %v744_v61, 1e-24  ;;  %v1351_v7 = vsub.f32 1.5, %v1350_v25 }
 0x26f   : > { %v3071_v16 = vpop.eup %2105  ;;  %v880_v45 = vmul.f32 %v2100_v8, %v879_v52  ;;  %v1358_v14 = vmul.f32 %v2104_v47, %v3038_v26  ;;  %vm1364_vm5 = vweird.f32 %v2104_v47 }
 0x270   : > { %v886_v12 = vmul.f32 %v3071_v16, %v3040_v2  ;;  %2107 = vrsqrt.f32 %v3067_v34  ;;  %v1352_v44 = vmul.f32 %v3042_v0, %v1351_v7  ;;  %vm1365_vm8 = vmor %vm1363_vm7, %vm1364_vm5  ;;  %vm892_vm9 = vweird.f32 %v3071_v16 }
 0x271   : > { %v884_v50 = vsel %vm883_vm2, %v2100_v8, %v880_v45  ;;  %v1359_v10 = vmul.f32 %v2104_v47, %v1358_v14  ;;  %2109 = vrsqrt.f32 %v3069_v62  ;;  %vm893_vm12 = vmor %vm891_vm10, %vm892_vm9  ;;  %vm901_vm13 = vweird.f32 %v3069_v62 }
 0x272   : > { %v3083_v24 = vmul.f32 %v884_v50, %v2785_v39  ;;  %v887_v19 = vmul.f32 %v3071_v16, %v886_v12  ;;  %v1356_v20 = vsel %vm1355_vm6, %v3042_v0, %v1352_v44  ;;  %vm1373_vm0 = vweird.f32 %v3067_v34 }
 0x273   : > { %v1360_v17 = vmul.f32 0.5, %v1359_v10  ;;  %v3107_v0 = vmul.f32 %v1356_v20, %v2788_v42 }
 0x274   : > { %v1834_v23 = vpack.c.bf16 %v3083_v24, %v3080_v54  ;;  %v888_v29 = vmul.f32 0.5, %v887_v19 }
 0x275   : > { %v1361_v56 = vsub.f32 1.5, %v1360_v17  ;;  %v746_v32 = vpop.xlane.xlu1 %745  ;;  %v1226_v1 = vpop.xlane.xlu0 %1225 }
 0x276   : > { %v3091_v21 = vpop.eup %2107  ;;  %1890 = vst [vmem:[%s2599_s4 + $0x28] sm:$0xff] %v1834_v23   ;;  %v3094_v39 = vmax.f32 %v746_v32, 1e-24  ;;  %v3096_v31 = vmax.f32 %v1226_v1, 1e-24  ;;  %v889_v41 = vsub.f32 1.5, %v888_v29 }
 0x277   : > { %v2110_v8 = vpop.eup %2109  ;;  %v1362_v40 = vmul.f32 %v2104_v47, %v1361_v56  ;;  %v1368_v22 = vmul.f32 %v3091_v21, %v3067_v34  ;;  %vm1374_vm15 = vweird.f32 %v3091_v21 }
 0x278   : > { %v896_v4 = vmul.f32 %v2110_v8, %v3069_v62  ;;  %2111 = vrsqrt.f32 %v3094_v39  ;;  %v890_v38 = vmul.f32 %v3071_v16, %v889_v41  ;;  %vm902_vm11 = vweird.f32 %v2110_v8  ;;  %vm3145_vm1 = vmor %vm1373_vm0, %vm1374_vm15 }
 0x279   : > { %v1366_v46 = vsel %vm1365_vm8, %v2104_v47, %v1362_v40  ;;  %v1369_v55 = vmul.f32 %v3091_v21, %v1368_v22  ;;  %2113 = vrsqrt.f32 %v3096_v31  ;;  %vm903_vm14 = vmor %vm901_vm13, %vm902_vm11  ;;  %vm1383_vm3 = vweird.f32 %v3096_v31 }
 0x27a   : > { %v3110_v26 = vmul.f32 %v1366_v46, %v2798_v51  ;;  %v897_v13 = vmul.f32 %v2110_v8, %v896_v4  ;;  %v894_v2 = vsel %vm893_vm12, %v3071_v16, %v890_v38  ;;  %v1495_v40 = vmul.f32 %v2998_v59, %v2968_v9 }
 0x27b   : > { %v1370_v43 = vmul.f32 0.5, %v1369_v55  ;;  %v3133_v10 = vmul.f32 %v894_v2, %v2795_v48  ;;  %v1494_v48 = vmul.f32 %v2995_v37, %v2963_v53  ;;  %vm911_vm7 = vweird.f32 %v3094_v39 }
 0x27c   : > { %v1874_v49 = vpack.c.bf16 %v3110_v26, %v3107_v0  ;;  %v898_v27 = vmul.f32 0.5, %v897_v13 }
 0x27d   : > { %v1228_v58 = vpop.xlane.xlu2 %1227  ;;  %v748_v25 = vpop.xlane.xlu0 %747  ;;  %v1371_v47 = vsub.f32 1.5, %v1370_v43  ;;  %v1509_v41 = vadd.f32 %v2945_v63, %v1494_v48 }
 0x27e   : > { %v3117_v52 = vpop.eup %2111  ;;  %1897 = vst [vmem:[%s2601_s18 + $0x28] sm:$0xff] %v1874_v49   ;;  %v899_v42 = vsub.f32 1.5, %v898_v27  ;;  %v3120_v51 = vmax.f32 %v1228_v58, 1e-24  ;;  %v3122_v28 = vmax.f32 %v748_v25, 1e-24  ;;  %v1497_v27 = vmul.f32 %v3057_v36, %v3026_v11 }
 0x27f   : > { %v2114_v61 = vpop.eup %2113  ;;  %v906_v5 = vmul.f32 %v3117_v52, %v3094_v39  ;;  %v1372_v62 = vmul.f32 %v3091_v21, %v1371_v47  ;;  %vm912_vm5 = vweird.f32 %v3117_v52  ;;  %v1510_v59 = vadd.f32 %v1509_v41, %v1495_v40 }
 0x280   : > { %v900_v45 = vmul.f32 %v2110_v8, %v899_v42  ;;  %v1378_v7 = vmul.f32 %v2114_v61, %v3096_v31  ;;  %2115 = vrsqrt.f32 %v3120_v51  ;;  %vm1384_vm2 = vweird.f32 %v2114_v61  ;;  %vm3171_vm9 = vmor %vm911_vm7, %vm912_vm5 }
 0x281   : > { %v907_v14 = vmul.f32 %v3117_v52, %v906_v5  ;;  %2117 = vrsqrt.f32 %v3122_v28  ;;  %v1376_v34 = vsel %vm3145_vm1, %v3091_v21, %v1372_v62  ;;  %vm1385_vm4 = vmor %vm1383_vm3, %vm1384_vm2  ;;  %v1496_v31 = vmul.f32 %v3054_v30, %v3022_v35 }
 0x282   : > { %v904_v12 = vsel %vm903_vm14, %v2110_v8, %v900_v45  ;;  %v1379_v50 = vmul.f32 %v2114_v61, %v1378_v7  ;;  %v1419_v46 = vmul.f32 %v1376_v34, %v2808_v60  ;;  %vm1393_vm10 = vweird.f32 %v3120_v51 }
 0x283   : > { %v3138_v16 = vmul.f32 %v904_v12, %v2805_v57  ;;  %v908_v19 = vmul.f32 0.5, %v907_v14  ;;  %v1498_v25 = vmul.f32 %v3107_v0, %v3080_v54  ;;  %vm921_vm12 = vweird.f32 %v3122_v28 }
 0x284   : > { %v1380_v44 = vmul.f32 0.5, %v1379_v50  ;;  %v1500_v2 = vmul.f32 %v1419_v46, %v3133_v10 }
 0x285   : > { %v1839_v17 = vpack.c.bf16 %v3138_v16, %v3133_v10  ;;  %v1230_v23 = vpop.xlane.xlu1 %1229  ;;  %v909_v20 = vsub.f32 1.5, %v908_v19 }
 0x286   : > { %v2116_v29 = vpop.eup %2115  ;;  %v1381_v32 = vsub.f32 1.5, %v1380_v44  ;;  %v3149_v57 = vmax.f32 %v1230_v23, 1e-24 }
 0x287   : > { %v2118_v1 = vpop.eup %2117  ;;  %1891 = vst [vmem:[%s2599_s4 + $0x30] sm:$0xff] %v1839_v17   ;;  %v1388_v8 = vmul.f32 %v2116_v29, %v3120_v51  ;;  %v910_v43 = vmul.f32 %v3117_v52, %v909_v20  ;;  %vm1394_vm6 = vweird.f32 %v2116_v29  ;;  %v1499_v51 = vmul.f32 %v3110_v26, %v3083_v24 }
 0x288   : > { %v1382_v53 = vmul.f32 %v2114_v61, %v1381_v32  ;;  %v916_v37 = vmul.f32 %v2118_v1, %v3122_v28  ;;  %2119 = vrsqrt.f32 %v3149_v57  ;;  %vm922_vm8 = vweird.f32 %v2118_v1  ;;  %vm1395_vm11 = vmor %vm1393_vm10, %vm1394_vm6 }
 0x289   : > { %v1389_v22 = vmul.f32 %v2116_v29, %v1388_v8  ;;  %v914_v11 = vsel %vm3171_vm9, %v3117_v52, %v910_v43  ;;  %vm923_vm13 = vmor %vm921_vm12, %vm922_vm8  ;;  %vm1403_vm15 = vweird.f32 %v3149_v57 }
 0x28a   : > { %v1386_v4 = vsel %vm1385_vm4, %v2114_v61, %v1382_v53  ;;  %v917_v21 = vmul.f32 %v2118_v1, %v916_v37  ;;  %v939_v54 = vmul.f32 %v914_v11, %v2815_v3 }
 0x28b   : > { %v1420_v55 = vmul.f32 %v1386_v4, %v2818_v6  ;;  %v1390_v13 = vmul.f32 0.5, %v1389_v22  ;;  %v1511_v6 = vadd.f32 %v1510_v59, %v1496_v31 }
 0x28c   : > { %v918_v9 = vmul.f32 0.5, %v917_v21 }
 0x28d   : > { %v1879_v49 = vpack.c.bf16 %v1420_v55, %v1419_v46  ;;  %v1391_v38 = vsub.f32 1.5, %v1390_v13  ;;  %v1512_v61 = vadd.f32 %v1511_v6, %v1497_v27  ;;  %v1501_v14 = vmul.f32 %v1420_v55, %v3138_v16 }
 0x28e   : > { %v2120_v63 = vpop.eup %2119  ;;  %v919_v60 = vsub.f32 1.5, %v918_v9 }
 0x28f   : > { %1898 = vst [vmem:[%s2601_s18 + $0x30] sm:$0xff] %v1879_v49   ;;  %v1392_v30 = vmul.f32 %v2116_v29, %v1391_v38  ;;  %v1398_v58 = vmul.f32 %v2120_v63, %v3149_v57  ;;  %v1513_v45 = vadd.f32 %v1512_v61, %v1498_v25  ;;  %vm1404_vm14 = vweird.f32 %v2120_v63 }
 0x290   : > { %v920_v36 = vmul.f32 %v2118_v1, %v919_v60  ;;  %vm1405_vm0 = vmor %vm1403_vm15, %vm1404_vm14 }
 0x291   : > { %v1396_v39 = vsel %vm1395_vm11, %v2116_v29, %v1392_v30  ;;  %v1399_v42 = vmul.f32 %v2120_v63, %v1398_v58  ;;  %v1514_v12 = vadd.f32 %v1513_v45, %v1499_v51 }
 0x292   : > { %v924_v47 = vsel %vm923_vm13, %v2118_v1, %v920_v36  ;;  %v1421_v52 = vmul.f32 %v1396_v39, %v2828_v18 }
 0x293   : > { %v1400_v5 = vmul.f32 0.5, %v1399_v42  ;;  %v940_v0 = vmul.f32 %v924_v47, %v2825_v15  ;;  %v1515_v15 = vadd.f32 %v1514_v12, %v1500_v2 }
 0x294   : > { %v1502_v3 = vmul.f32 %v1421_v52, %v939_v54 }
 0x295   : > { %v1401_v28 = vsub.f32 1.5, %v1400_v5  ;;  %v1844_v7 = vpack.c.bf16 %v940_v0, %v939_v54  ;;  %v1516_v50 = vadd.f32 %v1515_v15, %v1501_v14 }
 0x297   : > { %v1402_v24 = vmul.f32 %v2120_v63, %v1401_v28  ;;  %1892 = vst [vmem:[%s2599_s4 + $0x38] sm:$0xff] %v1844_v7   ;;  %v1517_v19 = vadd.f32 %v1516_v50, %v1502_v3 }
 0x299   : > { %v1406_v18 = vsel %vm1405_vm0, %v2120_v63, %v1402_v24 }
 0x29a   : > { %v1422_v26 = vmul.f32 %v1406_v18, %v2835_v33 }
 0x29c   : > { %v1884_v10 = vpack.c.bf16 %v1422_v26, %v1421_v52  ;;  %v1503_v62 = vmul.f32 %v1422_v26, %v940_v0 }
 0x29e   : > { %1899 = vst [vmem:[%s2601_s18 + $0x38] sm:$0xff] %v1884_v10   ;;  %v1518_v16 = vadd.f32 %v1517_v19, %v1503_v62 }
 0x2a0   : > { %1519 = vadd.xlane.f32.xlu2 %v1518_v16 }
 0x2a1   : > { %2268 = shalt.err (!%p2265_p12)
}
 0x2a2   : > { %s2390_s16 = smov 64   ;;  %s2391_s18 = smov 4  }
 0x2a3   : > { %1915 = dma.vmem_to_hbm [thread:$0]  (%p2513_p5), %s1568_s13, 1024, %s1570_s29, %s1538_s12, %s2390_s16, %s2390_s16, %s2391_s18  }
 0x2a4   : > { %s1549_s26 = scalar_lea.hbm %s3262_s6, %s1804_s2  ;;  %s1550_s21 = sshll.u32 %s2599_s4, 4  ;;  %s1551_s21 = int_to_ptr.vmem [resolvable:$true] %s1550_s21 }
 0x2a5   : > { %s1552_s14 = sshll.u32 %s1549_s26, 4  ;;  %s1533_s0 = scalar_lea.sflag [#allocation4], %s2571_s10  ;;  %s1553_s14 = int_to_ptr.hbm [resolvable:$true] %s1552_s14 }
 0x2a6   : > { %s2283_s22 = sshra.s32 %s1553_s14, 4  ;;  %s2289_s13 = scalar_lea.hbm %s3262_s6, 128  ;;  %s2284_s22 = int_to_ptr.hbm [resolvable:$true] %s2283_s22 }
 0x2a7   : > { %s2285_s23 = scalar_lea.hbm %s2284_s22, 64  ;;  %p2290_p10 = scmp.lt.s32.totalorder %s2284_s22, %s3262_s6 }
 0x2a8   : > { %p2286_p13 = scmp.ne.s32.totalorder %s2284_s22, %s2285_s23  ;;  %p2291_p4 = scmp.lt.s32.totalorder %s2289_s13, %s2285_s23 }
 0x2aa   : > { %p2287_p3 = pnand %p2286_p13, %p2513_p5  ;;  %p2292_p1 = por %p2291_p4, %p2290_p10 }
 0x2ac   : > { %p2288_p7 = pneg %p2287_p3 }
 0x2ae   : > { %p2293_p9 = pnand %p2292_p1, %p2288_p7 }
 0x2b0   : > { %2296 = shalt.err (!%p2293_p9)
}
 0x2b1   : > { %1914 = dma.vmem_to_hbm [thread:$0]  (%p2513_p5), %s1551_s21, 1024, %s1553_s14, %s1533_s0, %s2390_s16, %s2390_s16, %s2391_s18   ;;  %v1487_v32 = vld [vmem:[#allocation13] sm:$0x1]  ;;  %vm1530_vm1 = vcmask 0  }
 0x2b2   : > { %s2392_s10 = smov [#allocation13]   ;;  %s1584_s20 = sshll.u32 %s3264_s8, 4  ;;  %s1585_s20 = int_to_ptr.hbm [resolvable:$true] %s1584_s20 }
 0x2b3   : > { %s1582_s4 = sshll.u32 %s2392_s10, 4  ;;  %p3303_p5 = scmp.eq.s32.totalorder %s2459_s9, 1  ;;  %s1583_s4 = int_to_ptr.vmem [resolvable:$true] %s1582_s4 }
 0x2b5   : > { %p3304_p11 = pmov %p3303_p5 }
 0x313   : > { %v1520_v33 = vpop.xlane.xlu2 %1519 }
 0x314   : > { %v1521_v44 = vrot.slane %v1520_v33, 4 }
 0x316   : > { %v1522_v17 = vadd.f32 %v1521_v44, %v1520_v33 }
 0x318   : > { %v1523_v23 = vrot.slane %v1522_v17, 2 }
 0x31a   : > { %v1524_v29 = vadd.f32 %v1523_v23, %v1522_v17 }
 0x31c   : > { %v1525_v48 = vrot.slane %v1524_v29, 1 }
 0x31e   : > { %v1526_v56 = vadd.f32 %v1525_v48, %v1524_v29 }
 0x320   : > { %1900 = vpush %v1526_v56 }
 0x351   : > { %s1901_s24 = spop %1900 }
 0x352   : > { %v1528_v57 = vstv %s1901_s24 }
 0x353   : > { %v1529_v1 = vadd.f32 %v1528_v57, %v1487_v32 }
 0x355   : > { %1531 = vst.msk [vmem:[#allocation13] sm:$0x1] %vm1530_vm1, %v1529_v1 }
 0x356   : > { %1917 = dma.vmem_to_hbm [thread:$0]  (%p3303_p5), %s1583_s4, 16, %s1585_s20, [#allocation12]  }
 0x357   : > { %2358 = dma.done.wait (%p3304_p11), [#allocation12], 16   ;;  %p3305_p0 = pmov %p3303_p5 }
 0x359   : > { %2360 = vsyncadd (%p3305_p0), [#allocation12], 4294967280 }
 0x35a PF: > { %s1601_s16 = sand.u32 1, %s2371_s27   ;;  %p3307_p2 = scmp.ge.s32.totalorder %s2383_s30, 2 }
 0x35b   : > { %s1602_s18 = scalar_lea.sflag [#allocation4], %s1601_s16 }
 0x35c   : > { %p1937_p8 = pnand %p3307_p2, %p2475_p6 }
 0x35e   : > { %p1938_p12 = pneg %p1937_p8 }
 0x360   : > { %2362 = dma.done.wait (%p1938_p12), %s1602_s18, 1024  }
 0x361   : > { %2364 = vsyncadd (%p1938_p12), %s1602_s18, 4294966272  ;;  %s3308_s25 = sadd.s32 4294967294, %s2383_s30  }
 0x362   : > { %s1611_s26 = sand.u32 1, %s3308_s25  }
 0x363   : > { %s1612_s21 = scalar_lea.sflag [#allocation12], %s1611_s26 }
 0x364   : > { %2366 = dma.done.wait (%p1938_p12), %s1612_s21, 1024  }
 0x365   : > { %2368 = vsyncadd (%p1938_p12), %s1612_s21, 4294966272  ;;  %s3309_s30 = sld [smem:[#allocation23_spill]]  ;;  %s3312_s27 = smov %s2375_s28 }
 0x366   : > { %s3310_s9 = sld [smem:[#allocation21_spill]] }
 0x367   : > { %s3311_s29 = sld [smem:[#allocation24_spill]] }
 0x36b   : > { %p29_p13 = scmp.ge.s32.totalorder %s3309_s30, 4  }
 0x36c   : > { %s3313_s28 = smov %s3310_s9 }
 0x36d   :  { %31 = sbr.rel (!%p29_p13) target bundleno = 14 (0xe), region = 139 }
 0x372   :  { %1618 = vsyncpa [#allocation3], 1 }
 0x373   :  { %1620 = vsyncpa [#allocation3 + $0x1], 1 }
 0x374   :  { %1621 = vsyncpa [#allocation6], 1 }
 0x375   :  { %1623 = vsyncpa [#allocation6 + $0x1], 1 }
 0x376   :  { %1624 = vsyncpa [#allocation9], 1 }
 0x377   :  { %1625 = vsyncpa [#allocation4], 1 }
 0x378   :  { %1627 = vsyncpa [#allocation4 + $0x1], 1 }
 0x379   :  { %1628 = vsyncpa [#allocation12], 1 }
 0x37a   :  { %1630 = vsyncpa [#allocation12 + $0x1], 1 }

</bundles_post_ra>
